<compile_context>
chip_gen: v6e
topology: v6e:2x2x1
jax: 0.10.0
libtpu: 0.0.40
codegen_flags: <defaults>
</compile_context>

<pallas_src>
import math

import jax
import jax.numpy as jnp
from jax.experimental import pallas as pl
from jax.experimental.pallas import tpu as pltpu


# ----------------------------- tiling helpers -----------------------------

def _pick_tile(dim, preferred):
    """Largest preferred tile that evenly divides `dim`; fall back to the full dim."""
    for t in preferred:
        if dim % t == 0:
            return t
    # TODO(synk): pad non-128-divisible production shapes instead of a full-dim block.
    return dim


def _padded_bytes(shape, itemsize):
    """VMEM footprint of an array, accounting for (8, 128) tile padding of the last two dims."""
    s = list(shape)
    s[-1] = -(-s[-1] // 128) * 128
    if len(s) >= 2:
        s[-2] = -(-s[-2] // 8) * 8
    n = itemsize
    for d in s:
        n *= d
    return n


def _vmem_limit_bytes():
    """Conservative scoped-VMEM limit valid across v5e/v6e (128 MiB) and v7x (64 MiB)."""
    cap = 64 * 1024 * 1024
    try:
        info = pltpu.get_tpu_info()
        cap = int(getattr(info, "vmem_capacity_bytes", cap))
    except Exception:
        pass
    return int(min(3 * cap // 4, 64 * 1024 * 1024))


def _attn_vmem_bytes(tq, tk, h_blk, hd, mqb):
    """Per-step VMEM footprint of the flash kernel (double-buffered blocks + scratch + temps)."""
    b = 2 * _padded_bytes((tq, h_blk, hd), 2)                 # q block (bf16), double-buffered
    b += 2 * 2 * _padded_bytes((tk, h_blk, hd), 2)            # k and v blocks
    b += 2 * 2 * _padded_bytes((mqb, tk), 4)                  # mask and mbias blocks (f32)
    b += 2 * _padded_bytes((tq, h_blk * hd), 2)               # output block (bf16)
    b += 2 * _padded_bytes((tq, h_blk), 4)                    # running max / running sum scratch
    b += _padded_bytes((h_blk, tq, hd), 4)                    # f32 output accumulator scratch
    # live scores/probs temporaries (per-head lifetimes; count ~2 heads for headroom)
    b += 2 * (2 * _padded_bytes((tq, tk), 4) + _padded_bytes((tq, tk), 2))
    return b


def _pick_head_block(nh, hd, tq, tk, mqb, budget):
    """Head-block size: layout-legal ((8,128) rule, lane-dense output) and within VMEM budget."""
    valid = [h for h in range(1, nh + 1)
             if nh % h == 0
             and (h % 8 == 0 or h == nh)              # q/kv blocks: (.., h_blk, hd) sublane rule
             and ((h * hd) % 128 == 0 or h == nh)]    # output block: lane-dense (tq, h_blk*hd)
    fitting = [h for h in valid if _attn_vmem_bytes(tq, tk, h, hd, mqb) <= budget]
    if fitting:
        small = [h for h in fitting if h <= 8]        # >8 heads/step buys little, eats VMEM
        return max(small) if small else min(fitting)
    return min(valid)                                  # layout-forced minimum


# ----------------------------- Pallas kernels -----------------------------

def _linear_kernel(x_ref, w_ref, b_ref, o_ref, acc_ref):
    """Tiled y = x @ w + b.  x:(tm,tk) f32 (cast to bf16 on-chip), w:(tk,tn) bf16, b:(1,tn) f32."""
    k = pl.program_id(2)

    @pl.when(k == 0)
    def _():
        acc_ref[...] = jnp.zeros_like(acc_ref)

    acc_ref[...] += jnp.dot(x_ref[...].astype(jnp.bfloat16), w_ref[...],
                            preferred_element_type=jnp.float32)

    @pl.when(k == pl.num_programs(2) - 1)
    def _():
        o_ref[...] = (acc_ref[...] + b_ref[...]).astype(o_ref.dtype)


def _flash_attention_kernel(q_ref, k_ref, v_ref, mask_ref, mbias_ref, o_ref,
                            m_sc, l_sc, acc_sc):
    """Flash-style cross attention for one (batch, head-block, q-tile); kv tiled on grid axis 3.

    q_ref:(tq,h_blk,hd) bf16 (query scaling folded into Wq/bq), k_ref/v_ref:(tk,h_blk,hd) bf16,
    mask_ref/mbias_ref:({1|tq},tk) f32, o_ref:(tq,h_blk*hd).
    Per-head 2-D MXU matmuls (no in-kernel 3-D transposes); softmax math in f32.
    """
    ki = pl.program_id(3)
    h_blk = q_ref.shape[1]
    hd = q_ref.shape[2]

    @pl.when(ki == 0)
    def _():
        m_sc[...] = jnp.full(m_sc.shape, -1e30, dtype=jnp.float32)
        l_sc[...] = jnp.zeros_like(l_sc)
        acc_sc[...] = jnp.zeros_like(acc_sc)

    m = mask_ref[...]      # ({1|tq}, tk) f32, broadcast over q rows if needed
    mb = mbias_ref[...]    # additive -10000*(1-mask), precomputed in the wrapper

    last = ki == pl.num_programs(3) - 1

    for h in range(h_blk):                         # static unroll: per-head 2-D ops only
        q_h = q_ref[:, h, :]                       # (tq, hd) bf16
        k_h = k_ref[:, h, :]                       # (tk, hd) bf16
        v_h = v_ref[:, h, :]                       # (tk, hd) bf16

        # q @ k^T, contracting head_dim (NT matmul on the MXU, f32 accumulate).
        s = jnp.einsum('qd,kd->qk', q_h, k_h,
                       preferred_element_type=jnp.float32)          # (tq, tk) f32
        s = s * m + mb                                              # reference masking

        m_prev = m_sc[:, h:h + 1]                                   # (tq, 1)
        m_new = jnp.maximum(m_prev, jnp.max(s, axis=-1, keepdims=True))
        alpha = jnp.exp(m_prev - m_new)
        p = jnp.exp(s - m_new)                                      # (tq, tk) f32
        l_new = alpha * l_sc[:, h:h + 1] + jnp.sum(p, axis=-1, keepdims=True)

        pv = jnp.dot(p.astype(v_h.dtype), v_h,
                     preferred_element_type=jnp.float32)            # (tq, hd) f32
        acc_new = alpha * acc_sc[h] + pv

        m_sc[:, h:h + 1] = m_new
        l_sc[:, h:h + 1] = l_new
        acc_sc[h] = acc_new

        @pl.when(last)
        def _(acc_new=acc_new, l_new=l_new, h=h):
            # approx reciprocal (EUP slot): inference-grade, not bit-exact division.
            inv_l = pl.reciprocal(l_new, approx=True)               # (tq, 1)
            o_ref[:, h * hd:(h + 1) * hd] = (acc_new * inv_l).astype(o_ref.dtype)


# ----------------------------- wrappers -----------------------------

def pallas_linear(x2d, w_t, b, out_dtype):
    """y = x2d @ w_t + b.   x2d:(M,K) f32/bf16, w_t:(K,N) bf16 (pre-transposed), b:(1,N) f32."""
    M, K = x2d.shape
    N = w_t.shape[1]
    tm = _pick_tile(M, (256, 128))
    tn = _pick_tile(N, (512, 256, 128))
    tk = _pick_tile(K, (512, 256, 128))
    grid = (M // tm, N // tn, K // tk)

    return pl.pallas_call(
        _linear_kernel,
        out_shape=jax.ShapeDtypeStruct((M, N), out_dtype),
        grid_spec=pltpu.PrefetchScalarGridSpec(
            num_scalar_prefetch=0,
            grid=grid,
            in_specs=[
                pl.BlockSpec((tm, tk), lambda i, j, k: (i, k)),
                pl.BlockSpec((tk, tn), lambda i, j, k: (k, j)),
                pl.BlockSpec((1, tn), lambda i, j, k: (0, j)),
            ],
            out_specs=pl.BlockSpec((tm, tn), lambda i, j, k: (i, j)),
            scratch_shapes=[pltpu.VMEM((tm, tn), jnp.float32)],
        ),
        compiler_params=pltpu.CompilerParams(
            dimension_semantics=("parallel", "parallel", "arbitrary")),
    )(x2d, w_t, b)


def pallas_flash_attention(q4, kv5, mask_f, mbias):
    """q4:(B,Sq,nh,hd) bf16; kv5:(B,Sk,2,nh,hd) bf16 (axis 2: 0=K, 1=V);
    mask_f/mbias:(B,{1|Sq},Sk) f32.  Returns ctx:(B,Sq,nh*hd) bf16 (projection-ready layout)."""
    B, Sq, nh, hd = q4.shape
    Sk = kv5.shape[1]
    IH = nh * hd
    mq = mask_f.shape[1]

    vmem_limit = _vmem_limit_bytes()
    budget = min(vmem_limit // 2, 24 * 1024 * 1024)

    tq = _pick_tile(Sq, (512, 256, 128))     # prefer big q tiles: K/V HBM re-reads scale 1/tq
    tk = _pick_tile(Sk, (256, 128))          # tk capped at 256 (v7x 64 MiB VMEM friendly)
    mqb = 1 if mq == 1 else tq
    h_blk = _pick_head_block(nh, hd, tq, tk, mqb, budget)
    nhb = nh // h_blk

    grid = (B, nhb, Sq // tq, Sk // tk)

    q_spec = pl.BlockSpec((None, tq, h_blk, hd), lambda b, h, qi, ki: (b, qi, h, 0))
    k_spec = pl.BlockSpec((None, tk, None, h_blk, hd), lambda b, h, qi, ki: (b, ki, 0, h, 0))
    v_spec = pl.BlockSpec((None, tk, None, h_blk, hd), lambda b, h, qi, ki: (b, ki, 1, h, 0))
    if mq == 1:
        mask_idx = lambda b, h, qi, ki: (b, 0, ki)
    else:
        mask_idx = lambda b, h, qi, ki: (b, qi, ki)
    mask_spec = pl.BlockSpec((None, mqb, tk), mask_idx)
    mbias_spec = pl.BlockSpec((None, mqb, tk), mask_idx)
    out_spec = pl.BlockSpec((None, tq, h_blk * hd), lambda b, h, qi, ki: (b, qi, h))

    return pl.pallas_call(
        _flash_attention_kernel,
        out_shape=jax.ShapeDtypeStruct((B, Sq, IH), jnp.bfloat16),
        grid_spec=pltpu.PrefetchScalarGridSpec(
            num_scalar_prefetch=0,
            grid=grid,
            in_specs=[q_spec, k_spec, v_spec, mask_spec, mbias_spec],
            out_specs=out_spec,
            scratch_shapes=[
                pltpu.VMEM((tq, h_blk), jnp.float32),       # running max (per head column)
                pltpu.VMEM((tq, h_blk), jnp.float32),       # running sum
                pltpu.VMEM((h_blk, tq, hd), jnp.float32),   # f32 output accumulator
            ],
        ),
        compiler_params=pltpu.CompilerParams(
            dimension_semantics=("parallel", "parallel", "parallel", "arbitrary"),
            vmem_limit_bytes=vmem_limit,
        ),
    )(q4, kv5, kv5, mask_f, mbias)


class CrossAttentionParams:
    """Deterministically-initialized parameters matching the PyTorch module shapes, plus
    kernel-ready (pre-transposed, bf16, query-scale-folded, fused-KV) copies."""

    def __init__(self, key, hidden_size, num_attention_heads,
                 hidden_size_per_attention_head=None):
        self.hidden_size = hidden_size
        self.num_heads = num_attention_heads
        self.head_dim = (
            hidden_size // num_attention_heads
            if hidden_size_per_attention_head is None
            else hidden_size_per_attention_head
        )
        self.inner_hidden = self.num_heads * self.head_dim
        IH = self.inner_hidden

        ks = jax.random.split(key, 6)
        s = 0.02
        # PyTorch nn.Linear weight layout: (out_features, in_features) -- f32 "master" copies.
        self.wq = s * jax.random.normal(ks[0], (IH, hidden_size), jnp.float32)
        self.bq = s * jax.random.normal(ks[1], (IH,), jnp.float32)
        self.wkv = s * jax.random.normal(ks[2], (2 * IH, hidden_size), jnp.float32)
        self.bkv = s * jax.random.normal(ks[3], (2 * IH,), jnp.float32)
        self.wd = s * jax.random.normal(ks[4], (hidden_size, IH), jnp.float32)
        self.bd = s * jax.random.normal(ks[5], (hidden_size,), jnp.float32)

        # Kernel-ready copies (computed once):
        #  * (in, out) layout so matmul kernels need no transpose
        #  * 1/sqrt(head_dim) query scaling folded into Wq / bq
        #  * bf16 MXU weight operands; biases stay f32 (added to the f32 accumulator)
        #  * K/V projection stays fused: a single (H, 2*IH) weight, columns [K | V]
        inv_scale = 1.0 / math.sqrt(self.head_dim)
        self.wq_t = (self.wq * inv_scale).T.astype(jnp.bfloat16)
        self.bq_s = (self.bq * inv_scale).reshape(1, IH).astype(jnp.float32)
        self.wkv_t = self.wkv.T.astype(jnp.bfloat16)
        self.bkv2 = self.bkv.reshape(1, 2 * IH).astype(jnp.float32)
        self.wd_t = self.wd.T.astype(jnp.bfloat16)
        self.bd2 = self.bd.reshape(1, hidden_size).astype(jnp.float32)


def cross_attention_forward(params, hidden_states, cross_attention_mask, encoder_outputs):
    """CrossAttention forward (inference: dropouts are identity). Fully jit-able, no host sync."""
    B, Sq, H = hidden_states.shape
    Sk = encoder_outputs.shape[1]
    nh, hd, IH = params.num_heads, params.head_dim, params.inner_hidden
    out_dtype = hidden_states.dtype

    # Activations stay f32 here; the linear kernel casts each tile to bf16 on-chip.
    x_q = hidden_states.reshape(B * Sq, H)
    x_kv = encoder_outputs.reshape(B * Sk, H)

    # --- projections: query (scale folded) + fused key/value (one matmul, one x_kv read) ---
    q2d = pallas_linear(x_q, params.wq_t, params.bq_s, jnp.bfloat16)      # (B*Sq, IH)
    kv2d = pallas_linear(x_kv, params.wkv_t, params.bkv2, jnp.bfloat16)   # (B*Sk, 2*IH)

    # Head-split views are free reshapes; no wrapper-side transposes anywhere.
    q4 = q2d.reshape(B, Sq, nh, hd)
    kv5 = kv2d.reshape(B, Sk, 2, nh, hd)      # axis 2: 0 -> K heads, 1 -> V heads

    # Reference masking scores*m - 10000*(1-m); additive part precomputed once in f32.
    # Always applied (identical result for the module's 0/1 masks; avoids a host sync).
    assert cross_attention_mask.ndim == 4 and cross_attention_mask.shape[1] == 1
    mq = cross_attention_mask.shape[2]
    mask_f = cross_attention_mask.astype(jnp.float32).reshape(B, mq, Sk)
    mbias = -10000.0 * (1.0 - mask_f)

    # --- attention core (flash-style Pallas kernel), output already in (B, Sq, IH) layout ---
    ctx = pallas_flash_attention(q4, kv5, mask_f, mbias)

    # output dense (tiled Pallas matmul)
    out = pallas_linear(ctx.reshape(B * Sq, IH), params.wd_t, params.bd2, out_dtype)
    return out.reshape(B, Sq, params.hidden_size)


# ----------------------------- pure-JAX reference (f32) -----------------------------

def reference_forward(params, hidden_states, cross_attention_mask, encoder_outputs):
    B, Sq, H = hidden_states.shape
    Sk = encoder_outputs.shape[1]
    nh, hd, IH = params.num_heads, params.head_dim, params.inner_hidden

    q = hidden_states.reshape(-1, H) @ params.wq.T + params.bq
    kv = encoder_outputs.reshape(-1, H) @ params.wkv.T + params.bkv
    k, v = kv[:, :IH], kv[:, IH:]

    def split_heads(t, s):
        return t.reshape(B, s, nh, hd).transpose(0, 2, 1, 3)

    qh, kh, vh = split_heads(q, Sq), split_heads(k, Sk), split_heads(v, Sk)
    qh = qh / math.sqrt(hd)
    scores = jnp.einsum('bhqd,bhkd->bhqk', qh, kh)
    m = cross_attention_mask
    scores = scores * m - 10000.0 * (1.0 - m)
    probs = jax.nn.softmax(scores, axis=-1)
    ctx = jnp.einsum('bhqk,bhkd->bhqd', probs, vh)
    ctx = ctx.transpose(0, 2, 1, 3).reshape(B * Sq, IH)
    out = ctx @ params.wd.T + params.bd
    return out.reshape(B, Sq, H)


# ----------------------------- demo -----------------------------

if __name__ == "__main__":
    key = jax.random.PRNGKey(0)
    k_param, k_h, k_e, k_m = jax.random.split(key, 4)

    batch, seq_q, seq_kv, hidden, heads = 2, 8, 16, 32, 4
    params = CrossAttentionParams(k_param, hidden_size=hidden, num_attention_heads=heads)

    hidden_states = jax.random.normal(k_h, (batch, seq_q, hidden), jnp.float32)
    encoder_outputs = jax.random.normal(k_e, (batch, seq_kv, hidden), jnp.float32)
    # 0/1 cross-attention mask, broadcastable to scores [b, heads, seq_q, seq_kv]
    cross_attention_mask = (
        jax.random.uniform(k_m, (batch, 1, seq_q, seq_kv)) > 0.3
    ).astype(jnp.float32)

    fwd = jax.jit(lambda h, m, e: cross_attention_forward(params, h, m, e))
    out = fwd(hidden_states, cross_attention_mask, encoder_outputs)
    out = jax.block_until_ready(out)

    assert out.shape == (batch, seq_q, hidden)
    assert bool(jnp.all(jnp.isfinite(out)))

    # Tolerance check vs the f32 reference (kernel uses bf16 MXU operands + approx reciprocal).
    ref = reference_forward(params, hidden_states, cross_attention_mask, encoder_outputs)
    assert bool(jnp.allclose(out.astype(jnp.float32), ref, atol=5e-3, rtol=5e-2))

    print("KERNEL_OK")
</pallas_src>

<mosaic_0001>
module attributes {stable_mosaic.version = 11 : i64} {
  func.func @_linear_kernel(%arg0: i32, %arg1: i32, %arg2: i32, %arg3: memref<16x32xf32, #tpu.memory_space<vmem>>, %arg4: memref<32x32xbf16, #tpu.memory_space<vmem>>, %arg5: memref<1x32xf32, #tpu.memory_space<vmem>>, %arg6: memref<16x32xbf16, #tpu.memory_space<vmem>>, %arg7: memref<16x32xf32, #tpu.memory_space<vmem>>) attributes {dimension_semantics = [#tpu.dimension_semantics<parallel>, #tpu.dimension_semantics<parallel>, #tpu.dimension_semantics<arbitrary>], iteration_bounds = array<i64: 1, 1, 1>, scalar_prefetch = 0 : i64, scratch_operands = 1 : i64, tpu.core_type = #tpu.core_type<tc>, window_params = [{transform_indices = @transform_0, window_bounds = array<i64: 16, 32>}, {transform_indices = @transform_1, window_bounds = array<i64: 32, 32>}, {transform_indices = @transform_2, window_bounds = array<i64: 1, 32>}, {transform_indices = @transform_3, window_bounds = array<i64: 16, 32>}]} {
    %c0_i32 = arith.constant 0 : i32
    %0 = arith.cmpi eq, %arg2, %c0_i32 : i32
    %1 = arith.extui %0 : i1 to i32
    %c0_i32_0 = arith.constant 0 : i32
    %2 = arith.cmpi ne, %1, %c0_i32_0 : i32
    scf.if %2 {
      %cst_10 = arith.constant 0.000000e+00 : f32
      %13 = vector.broadcast %cst_10 : f32 to vector<16x32xf32>
      %c0_11 = arith.constant 0 : index
      %c0_12 = arith.constant 0 : index
      %14 = vector.load %arg7[%c0_11, %c0_12] : memref<16x32xf32, #tpu.memory_space<vmem>>, vector<16x32xf32>
      tpu.vector_store %arg7[%c0_11, %c0_12], %13 {strides = array<i32>} : memref<16x32xf32, #tpu.memory_space<vmem>>, vector<16x32xf32>,
    } else {
    }
    %c0 = arith.constant 0 : index
    %c0_1 = arith.constant 0 : index
    %3 = vector.load %arg7[%c0, %c0_1] : memref<16x32xf32, #tpu.memory_space<vmem>>, vector<16x32xf32>
    %c0_2 = arith.constant 0 : index
    %c0_3 = arith.constant 0 : index
    %4 = vector.load %arg3[%c0_2, %c0_3] : memref<16x32xf32, #tpu.memory_space<vmem>>, vector<16x32xf32>
    %5 = arith.truncf %4 : vector<16x32xf32> to vector<16x32xbf16>
    %c0_4 = arith.constant 0 : index
    %c0_5 = arith.constant 0 : index
    %6 = vector.load %arg4[%c0_4, %c0_5] : memref<32x32xbf16, #tpu.memory_space<vmem>>, vector<32x32xbf16>
    %cst = arith.constant dense<0.000000e+00> : vector<16x32xf32>
    %7 = tpu.matmul %5, %6, %cst {dimension_numbers = #tpu.dot_dimension_numbers<[1], [0], [0], [1], [0, 0, 1, 1], [], []>} : vector<16x32xbf16>, vector<32x32xbf16>, vector<16x32xf32> -> vector<16x32xf32>
    %8 = arith.addf %3, %7 : vector<16x32xf32>
    %c0_6 = arith.constant 0 : index
    %c0_7 = arith.constant 0 : index
    %9 = vector.load %arg7[%c0_6, %c0_7] : memref<16x32xf32, #tpu.memory_space<vmem>>, vector<16x32xf32>
    tpu.vector_store %arg7[%c0_6, %c0_7], %8 {strides = array<i32>} : memref<16x32xf32, #tpu.memory_space<vmem>>, vector<16x32xf32>,
    %c0_i32_8 = arith.constant 0 : i32
    %10 = arith.cmpi eq, %arg2, %c0_i32_8 : i32
    %11 = arith.extui %10 : i1 to i32
    %c0_i32_9 = arith.constant 0 : i32
    %12 = arith.cmpi ne, %11, %c0_i32_9 : i32
    scf.if %12 {
      %c0_10 = arith.constant 0 : index
      %c0_11 = arith.constant 0 : index
      %13 = vector.load %arg7[%c0_10, %c0_11] : memref<16x32xf32, #tpu.memory_space<vmem>>, vector<16x32xf32>
      %c0_12 = arith.constant 0 : index
      %c0_13 = arith.constant 0 : index
      %14 = vector.load %arg5[%c0_12, %c0_13] : memref<1x32xf32, #tpu.memory_space<vmem>>, vector<1x32xf32>
      %15 = vector.broadcast %14 : vector<1x32xf32> to vector<16x32xf32>
      %16 = arith.addf %13, %15 : vector<16x32xf32>
      %17 = arith.truncf %16 : vector<16x32xf32> to vector<16x32xbf16>
      %c0_14 = arith.constant 0 : index
      %c0_15 = arith.constant 0 : index
      %18 = vector.load %arg6[%c0_14, %c0_15] : memref<16x32xbf16, #tpu.memory_space<vmem>>, vector<16x32xbf16>
      tpu.vector_store %arg6[%c0_14, %c0_15], %17 {strides = array<i32>} : memref<16x32xbf16, #tpu.memory_space<vmem>>, vector<16x32xbf16>,
    } else {
    }
    return
  }
  func.func @transform_0(%arg0: i32, %arg1: i32, %arg2: i32) -> (i32, i32) {
    %c0_i32 = arith.constant 0 : i32
    return %arg0, %arg2 : i32, i32
  }
  func.func @transform_1(%arg0: i32, %arg1: i32, %arg2: i32) -> (i32, i32) {
    %c0_i32 = arith.constant 0 : i32
    return %arg2, %arg1 : i32, i32
  }
  func.func @transform_2(%arg0: i32, %arg1: i32, %arg2: i32) -> (i32, i32) {
    %c0_i32 = arith.constant 0 : i32
    %c0_i32_0 = arith.constant 0 : i32
    return %c0_i32, %arg1 : i32, i32
  }
  func.func @transform_3(%arg0: i32, %arg1: i32, %arg2: i32) -> (i32, i32) {
    %c0_i32 = arith.constant 0 : i32
    return %arg0, %arg1 : i32, i32
  }
}

module attributes {stable_mosaic.version = 11 : i64} {
  func.func @_linear_kernel(%arg0: i32, %arg1: i32, %arg2: i32, %arg3: memref<32x32xf32, #tpu.memory_space<vmem>>, %arg4: memref<32x64xbf16, #tpu.memory_space<vmem>>, %arg5: memref<1x64xf32, #tpu.memory_space<vmem>>, %arg6: memref<32x64xbf16, #tpu.memory_space<vmem>>, %arg7: memref<32x64xf32, #tpu.memory_space<vmem>>) attributes {dimension_semantics = [#tpu.dimension_semantics<parallel>, #tpu.dimension_semantics<parallel>, #tpu.dimension_semantics<arbitrary>], iteration_bounds = array<i64: 1, 1, 1>, scalar_prefetch = 0 : i64, scratch_operands = 1 : i64, tpu.core_type = #tpu.core_type<tc>, window_params = [{transform_indices = @transform_0, window_bounds = array<i64: 32, 32>}, {transform_indices = @transform_1, window_bounds = array<i64: 32, 64>}, {transform_indices = @transform_2, window_bounds = array<i64: 1, 64>}, {transform_indices = @transform_3, window_bounds = array<i64: 32, 64>}]} {
    %c0_i32 = arith.constant 0 : i32
    %0 = arith.cmpi eq, %arg2, %c0_i32 : i32
    %1 = arith.extui %0 : i1 to i32
    %c0_i32_0 = arith.constant 0 : i32
    %2 = arith.cmpi ne, %1, %c0_i32_0 : i32
    scf.if %2 {
      %cst_10 = arith.constant 0.000000e+00 : f32
      %13 = vector.broadcast %cst_10 : f32 to vector<32x64xf32>
      %c0_11 = arith.constant 0 : index
      %c0_12 = arith.constant 0 : index
      %14 = vector.load %arg7[%c0_11, %c0_12] : memref<32x64xf32, #tpu.memory_space<vmem>>, vector<32x64xf32>
      tpu.vector_store %arg7[%c0_11, %c0_12], %13 {strides = array<i32>} : memref<32x64xf32, #tpu.memory_space<vmem>>, vector<32x64xf32>,
    } else {
    }
    %c0 = arith.constant 0 : index
    %c0_1 = arith.constant 0 : index
    %3 = vector.load %arg7[%c0, %c0_1] : memref<32x64xf32, #tpu.memory_space<vmem>>, vector<32x64xf32>
    %c0_2 = arith.constant 0 : index
    %c0_3 = arith.constant 0 : index
    %4 = vector.load %arg3[%c0_2, %c0_3] : memref<32x32xf32, #tpu.memory_space<vmem>>, vector<32x32xf32>
    %5 = arith.truncf %4 : vector<32x32xf32> to vector<32x32xbf16>
    %c0_4 = arith.constant 0 : index
    %c0_5 = arith.constant 0 : index
    %6 = vector.load %arg4[%c0_4, %c0_5] : memref<32x64xbf16, #tpu.memory_space<vmem>>, vector<32x64xbf16>
    %cst = arith.constant dense<0.000000e+00> : vector<32x64xf32>
    %7 = tpu.matmul %5, %6, %cst {dimension_numbers = #tpu.dot_dimension_numbers<[1], [0], [0], [1], [0, 0, 1, 1], [], []>} : vector<32x32xbf16>, vector<32x64xbf16>, vector<32x64xf32> -> vector<32x64xf32>
    %8 = arith.addf %3, %7 : vector<32x64xf32>
    %c0_6 = arith.constant 0 : index
    %c0_7 = arith.constant 0 : index
    %9 = vector.load %arg7[%c0_6, %c0_7] : memref<32x64xf32, #tpu.memory_space<vmem>>, vector<32x64xf32>
    tpu.vector_store %arg7[%c0_6, %c0_7], %8 {strides = array<i32>} : memref<32x64xf32, #tpu.memory_space<vmem>>, vector<32x64xf32>,
    %c0_i32_8 = arith.constant 0 : i32
    %10 = arith.cmpi eq, %arg2, %c0_i32_8 : i32
    %11 = arith.extui %10 : i1 to i32
    %c0_i32_9 = arith.constant 0 : i32
    %12 = arith.cmpi ne, %11, %c0_i32_9 : i32
    scf.if %12 {
      %c0_10 = arith.constant 0 : index
      %c0_11 = arith.constant 0 : index
      %13 = vector.load %arg7[%c0_10, %c0_11] : memref<32x64xf32, #tpu.memory_space<vmem>>, vector<32x64xf32>
      %c0_12 = arith.constant 0 : index
      %c0_13 = arith.constant 0 : index
      %14 = vector.load %arg5[%c0_12, %c0_13] : memref<1x64xf32, #tpu.memory_space<vmem>>, vector<1x64xf32>
      %15 = vector.broadcast %14 : vector<1x64xf32> to vector<32x64xf32>
      %16 = arith.addf %13, %15 : vector<32x64xf32>
      %17 = arith.truncf %16 : vector<32x64xf32> to vector<32x64xbf16>
      %c0_14 = arith.constant 0 : index
      %c0_15 = arith.constant 0 : index
      %18 = vector.load %arg6[%c0_14, %c0_15] : memref<32x64xbf16, #tpu.memory_space<vmem>>, vector<32x64xbf16>
      tpu.vector_store %arg6[%c0_14, %c0_15], %17 {strides = array<i32>} : memref<32x64xbf16, #tpu.memory_space<vmem>>, vector<32x64xbf16>,
    } else {
    }
    return
  }
  func.func @transform_0(%arg0: i32, %arg1: i32, %arg2: i32) -> (i32, i32) {
    %c0_i32 = arith.constant 0 : i32
    return %arg0, %arg2 : i32, i32
  }
  func.func @transform_1(%arg0: i32, %arg1: i32, %arg2: i32) -> (i32, i32) {
    %c0_i32 = arith.constant 0 : i32
    return %arg2, %arg1 : i32, i32
  }
  func.func @transform_2(%arg0: i32, %arg1: i32, %arg2: i32) -> (i32, i32) {
    %c0_i32 = arith.constant 0 : i32
    %c0_i32_0 = arith.constant 0 : i32
    return %c0_i32, %arg1 : i32, i32
  }
  func.func @transform_3(%arg0: i32, %arg1: i32, %arg2: i32) -> (i32, i32) {
    %c0_i32 = arith.constant 0 : i32
    return %arg0, %arg1 : i32, i32
  }
}

module attributes {stable_mosaic.version = 11 : i64} {
  func.func @_flash_attention_kernel(%arg0: i32, %arg1: i32, %arg2: i32, %arg3: i32, %arg4: memref<1x8x4x8xbf16, #tpu.memory_space<vmem>>, %arg5: memref<1x16x1x4x8xbf16, #tpu.memory_space<vmem>>, %arg6: memref<1x16x1x4x8xbf16, #tpu.memory_space<vmem>>, %arg7: memref<1x8x16xf32, #tpu.memory_space<vmem>>, %arg8: memref<1x8x16xf32, #tpu.memory_space<vmem>>, %arg9: memref<1x8x32xbf16, #tpu.memory_space<vmem>>, %arg10: memref<8x4xf32, #tpu.memory_space<vmem>>, %arg11: memref<8x4xf32, #tpu.memory_space<vmem>>, %arg12: memref<4x8x8xf32, #tpu.memory_space<vmem>>) attributes {dimension_semantics = [#tpu.dimension_semantics<parallel>, #tpu.dimension_semantics<parallel>, #tpu.dimension_semantics<parallel>, #tpu.dimension_semantics<arbitrary>], iteration_bounds = array<i64: 2, 1, 1, 1>, scalar_prefetch = 0 : i64, scratch_operands = 3 : i64, tpu.core_type = #tpu.core_type<tc>, window_params = [{transform_indices = @transform_0, window_bounds = array<i64: 1, 8, 4, 8>}, {transform_indices = @transform_1, window_bounds = array<i64: 1, 16, 1, 4, 8>}, {transform_indices = @transform_2, window_bounds = array<i64: 1, 16, 1, 4, 8>}, {transform_indices = @transform_3, window_bounds = array<i64: 1, 8, 16>}, {transform_indices = @transform_4, window_bounds = array<i64: 1, 8, 16>}, {transform_indices = @transform_5, window_bounds = array<i64: 1, 8, 32>}]} {
    %c0_i32 = arith.constant 0 : i32
    %0 = arith.cmpi eq, %arg3, %c0_i32 : i32
    %1 = arith.extui %0 : i1 to i32
    %c0_i32_0 = arith.constant 0 : i32
    %2 = arith.cmpi ne, %1, %c0_i32_0 : i32
    scf.if %2 {
      %cst_135 = arith.constant -1.000000e+30 : f32
      %156 = vector.broadcast %cst_135 : f32 to vector<8x4xf32>
      %c0_136 = arith.constant 0 : index
      %c0_137 = arith.constant 0 : index
      %157 = vector.load %arg10[%c0_136, %c0_137] : memref<8x4xf32, #tpu.memory_space<vmem>>, vector<8x4xf32>
      tpu.vector_store %arg10[%c0_136, %c0_137], %156 {strides = array<i32>} : memref<8x4xf32, #tpu.memory_space<vmem>>, vector<8x4xf32>,
      %cst_138 = arith.constant 0.000000e+00 : f32
      %158 = vector.broadcast %cst_138 : f32 to vector<8x4xf32>
      %c0_139 = arith.constant 0 : index
      %c0_140 = arith.constant 0 : index
      %159 = vector.load %arg11[%c0_139, %c0_140] : memref<8x4xf32, #tpu.memory_space<vmem>>, vector<8x4xf32>
      tpu.vector_store %arg11[%c0_139, %c0_140], %158 {strides = array<i32>} : memref<8x4xf32, #tpu.memory_space<vmem>>, vector<8x4xf32>,
      %cst_141 = arith.constant 0.000000e+00 : f32
      %160 = vector.broadcast %cst_141 : f32 to vector<4x8x8xf32>
      %c0_142 = arith.constant 0 : index
      %c0_143 = arith.constant 0 : index
      %c0_144 = arith.constant 0 : index
      %161 = vector.load %arg12[%c0_142, %c0_143, %c0_144] : memref<4x8x8xf32, #tpu.memory_space<vmem>>, vector<4x8x8xf32>
      tpu.vector_store %arg12[%c0_142, %c0_143, %c0_144], %160 {strides = array<i32>} : memref<4x8x8xf32, #tpu.memory_space<vmem>>, vector<4x8x8xf32>,
    } else {
    }
    %c0 = arith.constant 0 : index
    %c0_1 = arith.constant 0 : index
    %c0_2 = arith.constant 0 : index
    %3 = vector.load %arg7[%c0, %c0_1, %c0_2] : memref<1x8x16xf32, #tpu.memory_space<vmem>>, vector<1x8x16xf32>
    %4 = vector.shape_cast %3 : vector<1x8x16xf32> to vector<8x16xf32>
    %c0_3 = arith.constant 0 : index
    %c0_4 = arith.constant 0 : index
    %c0_5 = arith.constant 0 : index
    %5 = vector.load %arg8[%c0_3, %c0_4, %c0_5] : memref<1x8x16xf32, #tpu.memory_space<vmem>>, vector<1x8x16xf32>
    %6 = vector.shape_cast %5 : vector<1x8x16xf32> to vector<8x16xf32>
    %c0_i32_6 = arith.constant 0 : i32
    %7 = arith.cmpi eq, %arg3, %c0_i32_6 : i32
    %c0_7 = arith.constant 0 : index
    %c0_8 = arith.constant 0 : index
    %c0_9 = arith.constant 0 : index
    %c0_10 = arith.constant 0 : index
    %8 = vector.load %arg4[%c0_7, %c0_8, %c0_9, %c0_10] : memref<1x8x4x8xbf16, #tpu.memory_space<vmem>>, vector<1x8x1x8xbf16>
    %9 = vector.shape_cast %8 : vector<1x8x1x8xbf16> to vector<8x8xbf16>
    %c0_11 = arith.constant 0 : index
    %c0_12 = arith.constant 0 : index
    %c0_13 = arith.constant 0 : index
    %c0_14 = arith.constant 0 : index
    %c0_15 = arith.constant 0 : index
    %10 = vector.load %arg5[%c0_11, %c0_12, %c0_13, %c0_14, %c0_15] : memref<1x16x1x4x8xbf16, #tpu.memory_space<vmem>>, vector<1x16x1x1x8xbf16>
    %11 = vector.shape_cast %10 : vector<1x16x1x1x8xbf16> to vector<16x8xbf16>
    %c0_16 = arith.constant 0 : index
    %c0_17 = arith.constant 0 : index
    %c0_18 = arith.constant 0 : index
    %c0_19 = arith.constant 0 : index
    %c0_20 = arith.constant 0 : index
    %12 = vector.load %arg6[%c0_16, %c0_17, %c0_18, %c0_19, %c0_20] : memref<1x16x1x4x8xbf16, #tpu.memory_space<vmem>>, vector<1x16x1x1x8xbf16>
    %13 = vector.shape_cast %12 : vector<1x16x1x1x8xbf16> to vector<16x8xbf16>
    "tpu.trace_start"() <{level = 10 : i32, message = "qd,kd->qk"}> : () -> ()
    %cst = arith.constant dense<0.000000e+00> : vector<8x16xf32>
    %14 = tpu.matmul %9, %11, %cst {dimension_numbers = #tpu.dot_dimension_numbers<[1], [1], [0], [0], [0, 0, 1, 0], [], []>} : vector<8x8xbf16>, vector<16x8xbf16>, vector<8x16xf32> -> vector<8x16xf32>
    "tpu.trace_stop"() : () -> ()
    %15 = arith.mulf %14, %4 : vector<8x16xf32>
    %16 = arith.addf %15, %6 : vector<8x16xf32>
    %c0_21 = arith.constant 0 : index
    %c0_22 = arith.constant 0 : index
    %17 = vector.load %arg10[%c0_21, %c0_22] : memref<8x4xf32, #tpu.memory_space<vmem>>, vector<8x1xf32>
    %cst_23 = arith.constant dense<0xFF800000> : vector<8xf32>
    %18 = vector.multi_reduction <maximumf>, %16, %cst_23 [1] : vector<8x16xf32> to vector<8xf32>
    %19 = vector.shape_cast %18 : vector<8xf32> to vector<8x1xf32>
    %20 = arith.maximumf %17, %19 : vector<8x1xf32>
    %21 = arith.subf %17, %20 : vector<8x1xf32>
    %22 = math.exp %21 : vector<8x1xf32>
    %23 = vector.broadcast %20 : vector<8x1xf32> to vector<8x16xf32>
    %24 = arith.subf %16, %23 : vector<8x16xf32>
    %25 = math.exp %24 : vector<8x16xf32>
    %c0_24 = arith.constant 0 : index
    %c0_25 = arith.constant 0 : index
    %26 = vector.load %arg11[%c0_24, %c0_25] : memref<8x4xf32, #tpu.memory_space<vmem>>, vector<8x1xf32>
    %27 = arith.mulf %22, %26 : vector<8x1xf32>
    %cst_26 = arith.constant dense<0.000000e+00> : vector<8xf32>
    %28 = vector.multi_reduction <add>, %25, %cst_26 [1] : vector<8x16xf32> to vector<8xf32>
    %29 = vector.shape_cast %28 : vector<8xf32> to vector<8x1xf32>
    %30 = arith.addf %27, %29 : vector<8x1xf32>
    %31 = arith.truncf %25 : vector<8x16xf32> to vector<8x16xbf16>
    %cst_27 = arith.constant dense<0.000000e+00> : vector<8x8xf32>
    %32 = tpu.matmul %31, %13, %cst_27 {dimension_numbers = #tpu.dot_dimension_numbers<[1], [0], [0], [1], [0, 0, 1, 1], [], []>} : vector<8x16xbf16>, vector<16x8xbf16>, vector<8x8xf32> -> vector<8x8xf32>
    %c0_28 = arith.constant 0 : index
    %c0_29 = arith.constant 0 : index
    %c0_30 = arith.constant 0 : index
    %33 = vector.load %arg12[%c0_28, %c0_29, %c0_30] : memref<4x8x8xf32, #tpu.memory_space<vmem>>, vector<1x8x8xf32>
    %34 = vector.shape_cast %33 : vector<1x8x8xf32> to vector<8x8xf32>
    %35 = vector.broadcast %22 : vector<8x1xf32> to vector<8x8xf32>
    %36 = arith.mulf %35, %34 : vector<8x8xf32>
    %37 = arith.addf %36, %32 : vector<8x8xf32>
    %c0_31 = arith.constant 0 : index
    %c0_32 = arith.constant 0 : index
    %38 = vector.load %arg10[%c0_31, %c0_32] : memref<8x4xf32, #tpu.memory_space<vmem>>, vector<8x1xf32>
    tpu.vector_store %arg10[%c0_31, %c0_32], %20 {strides = array<i32>} : memref<8x4xf32, #tpu.memory_space<vmem>>, vector<8x1xf32>,
    %c0_33 = arith.constant 0 : index
    %c0_34 = arith.constant 0 : index
    %39 = vector.load %arg11[%c0_33, %c0_34] : memref<8x4xf32, #tpu.memory_space<vmem>>, vector<8x1xf32>
    tpu.vector_store %arg11[%c0_33, %c0_34], %30 {strides = array<i32>} : memref<8x4xf32, #tpu.memory_space<vmem>>, vector<8x1xf32>,
    %c0_35 = arith.constant 0 : index
    %c0_36 = arith.constant 0 : index
    %c0_37 = arith.constant 0 : index
    %40 = vector.load %arg12[%c0_35, %c0_36, %c0_37] : memref<4x8x8xf32, #tpu.memory_space<vmem>>, vector<1x8x8xf32>
    %41 = vector.shape_cast %40 : vector<1x8x8xf32> to vector<8x8xf32>
    %42 = vector.shape_cast %37 : vector<8x8xf32> to vector<1x8x8xf32>
    tpu.vector_store %arg12[%c0_35, %c0_36, %c0_37], %42 {strides = array<i32>} : memref<4x8x8xf32, #tpu.memory_space<vmem>>, vector<1x8x8xf32>,
    %43 = arith.extui %7 : i1 to i32
    %c0_i32_38 = arith.constant 0 : i32
    %44 = arith.cmpi ne, %43, %c0_i32_38 : i32
    scf.if %44 {
      %156 = tpu.reciprocal %30 {approx = true} : vector<8x1xf32> -> vector<8x1xf32>
      %157 = vector.broadcast %156 : vector<8x1xf32> to vector<8x8xf32>
      %158 = arith.mulf %37, %157 : vector<8x8xf32>
      %159 = arith.truncf %158 : vector<8x8xf32> to vector<8x8xbf16>
      %c0_135 = arith.constant 0 : index
      %c0_136 = arith.constant 0 : index
      %c0_137 = arith.constant 0 : index
      %160 = vector.load %arg9[%c0_135, %c0_136, %c0_137] : memref<1x8x32xbf16, #tpu.memory_space<vmem>>, vector<1x8x8xbf16>
      %161 = vector.shape_cast %160 : vector<1x8x8xbf16> to vector<8x8xbf16>
      %162 = vector.shape_cast %159 : vector<8x8xbf16> to vector<1x8x8xbf16>
      tpu.vector_store %arg9[%c0_135, %c0_136, %c0_137], %162 {strides = array<i32>} : memref<1x8x32xbf16, #tpu.memory_space<vmem>>, vector<1x8x8xbf16>,
    } else {
    }
    %c0_39 = arith.constant 0 : index
    %c0_40 = arith.constant 0 : index
    %c1 = arith.constant 1 : index
    %c0_41 = arith.constant 0 : index
    %45 = vector.load %arg4[%c0_39, %c0_40, %c1, %c0_41] : memref<1x8x4x8xbf16, #tpu.memory_space<vmem>>, vector<1x8x1x8xbf16>
    %46 = vector.shape_cast %45 : vector<1x8x1x8xbf16> to vector<8x8xbf16>
    %c0_42 = arith.constant 0 : index
    %c0_43 = arith.constant 0 : index
    %c0_44 = arith.constant 0 : index
    %c1_45 = arith.constant 1 : index
    %c0_46 = arith.constant 0 : index
    %47 = vector.load %arg5[%c0_42, %c0_43, %c0_44, %c1_45, %c0_46] : memref<1x16x1x4x8xbf16, #tpu.memory_space<vmem>>, vector<1x16x1x1x8xbf16>
    %48 = vector.shape_cast %47 : vector<1x16x1x1x8xbf16> to vector<16x8xbf16>
    %c0_47 = arith.constant 0 : index
    %c0_48 = arith.constant 0 : index
    %c0_49 = arith.constant 0 : index
    %c1_50 = arith.constant 1 : index
    %c0_51 = arith.constant 0 : index
    %49 = vector.load %arg6[%c0_47, %c0_48, %c0_49, %c1_50, %c0_51] : memref<1x16x1x4x8xbf16, #tpu.memory_space<vmem>>, vector<1x16x1x1x8xbf16>
    %50 = vector.shape_cast %49 : vector<1x16x1x1x8xbf16> to vector<16x8xbf16>
    "tpu.trace_start"() <{level = 10 : i32, message = "qd,kd->qk"}> : () -> ()
    %cst_52 = arith.constant dense<0.000000e+00> : vector<8x16xf32>
    %51 = tpu.matmul %46, %48, %cst_52 {dimension_numbers = #tpu.dot_dimension_numbers<[1], [1], [0], [0], [0, 0, 1, 0], [], []>} : vector<8x8xbf16>, vector<16x8xbf16>, vector<8x16xf32> -> vector<8x16xf32>
    "tpu.trace_stop"() : () -> ()
    %52 = arith.mulf %51, %4 : vector<8x16xf32>
    %53 = arith.addf %52, %6 : vector<8x16xf32>
    %c0_53 = arith.constant 0 : index
    %c1_54 = arith.constant 1 : index
    %54 = vector.load %arg10[%c0_53, %c1_54] : memref<8x4xf32, #tpu.memory_space<vmem>>, vector<8x1xf32>
    %cst_55 = arith.constant dense<0xFF800000> : vector<8xf32>
    %55 = vector.multi_reduction <maximumf>, %53, %cst_55 [1] : vector<8x16xf32> to vector<8xf32>
    %56 = vector.shape_cast %55 : vector<8xf32> to vector<8x1xf32>
    %57 = arith.maximumf %54, %56 : vector<8x1xf32>
    %58 = arith.subf %54, %57 : vector<8x1xf32>
    %59 = math.exp %58 : vector<8x1xf32>
    %60 = vector.broadcast %57 : vector<8x1xf32> to vector<8x16xf32>
    %61 = arith.subf %53, %60 : vector<8x16xf32>
    %62 = math.exp %61 : vector<8x16xf32>
    %c0_56 = arith.constant 0 : index
    %c1_57 = arith.constant 1 : index
    %63 = vector.load %arg11[%c0_56, %c1_57] : memref<8x4xf32, #tpu.memory_space<vmem>>, vector<8x1xf32>
    %64 = arith.mulf %59, %63 : vector<8x1xf32>
    %cst_58 = arith.constant dense<0.000000e+00> : vector<8xf32>
    %65 = vector.multi_reduction <add>, %62, %cst_58 [1] : vector<8x16xf32> to vector<8xf32>
    %66 = vector.shape_cast %65 : vector<8xf32> to vector<8x1xf32>
    %67 = arith.addf %64, %66 : vector<8x1xf32>
    %68 = arith.truncf %62 : vector<8x16xf32> to vector<8x16xbf16>
    %cst_59 = arith.constant dense<0.000000e+00> : vector<8x8xf32>
    %69 = tpu.matmul %68, %50, %cst_59 {dimension_numbers = #tpu.dot_dimension_numbers<[1], [0], [0], [1], [0, 0, 1, 1], [], []>} : vector<8x16xbf16>, vector<16x8xbf16>, vector<8x8xf32> -> vector<8x8xf32>
    %c1_60 = arith.constant 1 : index
    %c0_61 = arith.constant 0 : index
    %c0_62 = arith.constant 0 : index
    %70 = vector.load %arg12[%c1_60, %c0_61, %c0_62] : memref<4x8x8xf32, #tpu.memory_space<vmem>>, vector<1x8x8xf32>
    %71 = vector.shape_cast %70 : vector<1x8x8xf32> to vector<8x8xf32>
    %72 = vector.broadcast %59 : vector<8x1xf32> to vector<8x8xf32>
    %73 = arith.mulf %72, %71 : vector<8x8xf32>
    %74 = arith.addf %73, %69 : vector<8x8xf32>
    %c0_63 = arith.constant 0 : index
    %c1_64 = arith.constant 1 : index
    %75 = vector.load %arg10[%c0_63, %c1_64] : memref<8x4xf32, #tpu.memory_space<vmem>>, vector<8x1xf32>
    tpu.vector_store %arg10[%c0_63, %c1_64], %57 {strides = array<i32>} : memref<8x4xf32, #tpu.memory_space<vmem>>, vector<8x1xf32>,
    %c0_65 = arith.constant 0 : index
    %c1_66 = arith.constant 1 : index
    %76 = vector.load %arg11[%c0_65, %c1_66] : memref<8x4xf32, #tpu.memory_space<vmem>>, vector<8x1xf32>
    tpu.vector_store %arg11[%c0_65, %c1_66], %67 {strides = array<i32>} : memref<8x4xf32, #tpu.memory_space<vmem>>, vector<8x1xf32>,
    %c1_67 = arith.constant 1 : index
    %c0_68 = arith.constant 0 : index
    %c0_69 = arith.constant 0 : index
    %77 = vector.load %arg12[%c1_67, %c0_68, %c0_69] : memref<4x8x8xf32, #tpu.memory_space<vmem>>, vector<1x8x8xf32>
    %78 = vector.shape_cast %77 : vector<1x8x8xf32> to vector<8x8xf32>
    %79 = vector.shape_cast %74 : vector<8x8xf32> to vector<1x8x8xf32>
    tpu.vector_store %arg12[%c1_67, %c0_68, %c0_69], %79 {strides = array<i32>} : memref<4x8x8xf32, #tpu.memory_space<vmem>>, vector<1x8x8xf32>,
    %80 = arith.extui %7 : i1 to i32
    %c0_i32_70 = arith.constant 0 : i32
    %81 = arith.cmpi ne, %80, %c0_i32_70 : i32
    scf.if %81 {
      %156 = tpu.reciprocal %67 {approx = true} : vector<8x1xf32> -> vector<8x1xf32>
      %157 = vector.broadcast %156 : vector<8x1xf32> to vector<8x8xf32>
      %158 = arith.mulf %74, %157 : vector<8x8xf32>
      %159 = arith.truncf %158 : vector<8x8xf32> to vector<8x8xbf16>
      %c0_135 = arith.constant 0 : index
      %c0_136 = arith.constant 0 : index
      %c8 = arith.constant 8 : index
      %160 = vector.load %arg9[%c0_135, %c0_136, %c8] : memref<1x8x32xbf16, #tpu.memory_space<vmem>>, vector<1x8x8xbf16>
      %161 = vector.shape_cast %160 : vector<1x8x8xbf16> to vector<8x8xbf16>
      %162 = vector.shape_cast %159 : vector<8x8xbf16> to vector<1x8x8xbf16>
      tpu.vector_store %arg9[%c0_135, %c0_136, %c8], %162 {strides = array<i32>} : memref<1x8x32xbf16, #tpu.memory_space<vmem>>, vector<1x8x8xbf16>,
    } else {
    }
    %c0_71 = arith.constant 0 : index
    %c0_72 = arith.constant 0 : index
    %c2 = arith.constant 2 : index
    %c0_73 = arith.constant 0 : index
    %82 = vector.load %arg4[%c0_71, %c0_72, %c2, %c0_73] : memref<1x8x4x8xbf16, #tpu.memory_space<vmem>>, vector<1x8x1x8xbf16>
    %83 = vector.shape_cast %82 : vector<1x8x1x8xbf16> to vector<8x8xbf16>
    %c0_74 = arith.constant 0 : index
    %c0_75 = arith.constant 0 : index
    %c0_76 = arith.constant 0 : index
    %c2_77 = arith.constant 2 : index
    %c0_78 = arith.constant 0 : index
    %84 = vector.load %arg5[%c0_74, %c0_75, %c0_76, %c2_77, %c0_78] : memref<1x16x1x4x8xbf16, #tpu.memory_space<vmem>>, vector<1x16x1x1x8xbf16>
    %85 = vector.shape_cast %84 : vector<1x16x1x1x8xbf16> to vector<16x8xbf16>
    %c0_79 = arith.constant 0 : index
    %c0_80 = arith.constant 0 : index
    %c0_81 = arith.constant 0 : index
    %c2_82 = arith.constant 2 : index
    %c0_83 = arith.constant 0 : index
    %86 = vector.load %arg6[%c0_79, %c0_80, %c0_81, %c2_82, %c0_83] : memref<1x16x1x4x8xbf16, #tpu.memory_space<vmem>>, vector<1x16x1x1x8xbf16>
    %87 = vector.shape_cast %86 : vector<1x16x1x1x8xbf16> to vector<16x8xbf16>
    "tpu.trace_start"() <{level = 10 : i32, message = "qd,kd->qk"}> : () -> ()
    %cst_84 = arith.constant dense<0.000000e+00> : vector<8x16xf32>
    %88 = tpu.matmul %83, %85, %cst_84 {dimension_numbers = #tpu.dot_dimension_numbers<[1], [1], [0], [0], [0, 0, 1, 0], [], []>} : vector<8x8xbf16>, vector<16x8xbf16>, vector<8x16xf32> -> vector<8x16xf32>
    "tpu.trace_stop"() : () -> ()
    %89 = arith.mulf %88, %4 : vector<8x16xf32>
    %90 = arith.addf %89, %6 : vector<8x16xf32>
    %c0_85 = arith.constant 0 : index
    %c2_86 = arith.constant 2 : index
    %91 = vector.load %arg10[%c0_85, %c2_86] : memref<8x4xf32, #tpu.memory_space<vmem>>, vector<8x1xf32>
    %cst_87 = arith.constant dense<0xFF800000> : vector<8xf32>
    %92 = vector.multi_reduction <maximumf>, %90, %cst_87 [1] : vector<8x16xf32> to vector<8xf32>
    %93 = vector.shape_cast %92 : vector<8xf32> to vector<8x1xf32>
    %94 = arith.maximumf %91, %93 : vector<8x1xf32>
    %95 = arith.subf %91, %94 : vector<8x1xf32>
    %96 = math.exp %95 : vector<8x1xf32>
    %97 = vector.broadcast %94 : vector<8x1xf32> to vector<8x16xf32>
    %98 = arith.subf %90, %97 : vector<8x16xf32>
    %99 = math.exp %98 : vector<8x16xf32>
    %c0_88 = arith.constant 0 : index
    %c2_89 = arith.constant 2 : index
    %100 = vector.load %arg11[%c0_88, %c2_89] : memref<8x4xf32, #tpu.memory_space<vmem>>, vector<8x1xf32>
    %101 = arith.mulf %96, %100 : vector<8x1xf32>
    %cst_90 = arith.constant dense<0.000000e+00> : vector<8xf32>
    %102 = vector.multi_reduction <add>, %99, %cst_90 [1] : vector<8x16xf32> to vector<8xf32>
    %103 = vector.shape_cast %102 : vector<8xf32> to vector<8x1xf32>
    %104 = arith.addf %101, %103 : vector<8x1xf32>
    %105 = arith.truncf %99 : vector<8x16xf32> to vector<8x16xbf16>
    %cst_91 = arith.constant dense<0.000000e+00> : vector<8x8xf32>
    %106 = tpu.matmul %105, %87, %cst_91 {dimension_numbers = #tpu.dot_dimension_numbers<[1], [0], [0], [1], [0, 0, 1, 1], [], []>} : vector<8x16xbf16>, vector<16x8xbf16>, vector<8x8xf32> -> vector<8x8xf32>
    %c2_92 = arith.constant 2 : index
    %c0_93 = arith.constant 0 : index
    %c0_94 = arith.constant 0 : index
    %107 = vector.load %arg12[%c2_92, %c0_93, %c0_94] : memref<4x8x8xf32, #tpu.memory_space<vmem>>, vector<1x8x8xf32>
    %108 = vector.shape_cast %107 : vector<1x8x8xf32> to vector<8x8xf32>
    %109 = vector.broadcast %96 : vector<8x1xf32> to vector<8x8xf32>
    %110 = arith.mulf %109, %108 : vector<8x8xf32>
    %111 = arith.addf %110, %106 : vector<8x8xf32>
    %c0_95 = arith.constant 0 : index
    %c2_96 = arith.constant 2 : index
    %112 = vector.load %arg10[%c0_95, %c2_96] : memref<8x4xf32, #tpu.memory_space<vmem>>, vector<8x1xf32>
    tpu.vector_store %arg10[%c0_95, %c2_96], %94 {strides = array<i32>} : memref<8x4xf32, #tpu.memory_space<vmem>>, vector<8x1xf32>,
    %c0_97 = arith.constant 0 : index
    %c2_98 = arith.constant 2 : index
    %113 = vector.load %arg11[%c0_97, %c2_98] : memref<8x4xf32, #tpu.memory_space<vmem>>, vector<8x1xf32>
    tpu.vector_store %arg11[%c0_97, %c2_98], %104 {strides = array<i32>} : memref<8x4xf32, #tpu.memory_space<vmem>>, vector<8x1xf32>,
    %c2_99 = arith.constant 2 : index
    %c0_100 = arith.constant 0 : index
    %c0_101 = arith.constant 0 : index
    %114 = vector.load %arg12[%c2_99, %c0_100, %c0_101] : memref<4x8x8xf32, #tpu.memory_space<vmem>>, vector<1x8x8xf32>
    %115 = vector.shape_cast %114 : vector<1x8x8xf32> to vector<8x8xf32>
    %116 = vector.shape_cast %111 : vector<8x8xf32> to vector<1x8x8xf32>
    tpu.vector_store %arg12[%c2_99, %c0_100, %c0_101], %116 {strides = array<i32>} : memref<4x8x8xf32, #tpu.memory_space<vmem>>, vector<1x8x8xf32>,
    %117 = arith.extui %7 : i1 to i32
    %c0_i32_102 = arith.constant 0 : i32
    %118 = arith.cmpi ne, %117, %c0_i32_102 : i32
    scf.if %118 {
      %156 = tpu.reciprocal %104 {approx = true} : vector<8x1xf32> -> vector<8x1xf32>
      %157 = vector.broadcast %156 : vector<8x1xf32> to vector<8x8xf32>
      %158 = arith.mulf %111, %157 : vector<8x8xf32>
      %159 = arith.truncf %158 : vector<8x8xf32> to vector<8x8xbf16>
      %c0_135 = arith.constant 0 : index
      %c0_136 = arith.constant 0 : index
      %c16 = arith.constant 16 : index
      %160 = vector.load %arg9[%c0_135, %c0_136, %c16] : memref<1x8x32xbf16, #tpu.memory_space<vmem>>, vector<1x8x8xbf16>
      %161 = vector.shape_cast %160 : vector<1x8x8xbf16> to vector<8x8xbf16>
      %162 = vector.shape_cast %159 : vector<8x8xbf16> to vector<1x8x8xbf16>
      tpu.vector_store %arg9[%c0_135, %c0_136, %c16], %162 {strides = array<i32>} : memref<1x8x32xbf16, #tpu.memory_space<vmem>>, vector<1x8x8xbf16>,
    } else {
    }
    %c0_103 = arith.constant 0 : index
    %c0_104 = arith.constant 0 : index
    %c3 = arith.constant 3 : index
    %c0_105 = arith.constant 0 : index
    %119 = vector.load %arg4[%c0_103, %c0_104, %c3, %c0_105] : memref<1x8x4x8xbf16, #tpu.memory_space<vmem>>, vector<1x8x1x8xbf16>
    %120 = vector.shape_cast %119 : vector<1x8x1x8xbf16> to vector<8x8xbf16>
    %c0_106 = arith.constant 0 : index
    %c0_107 = arith.constant 0 : index
    %c0_108 = arith.constant 0 : index
    %c3_109 = arith.constant 3 : index
    %c0_110 = arith.constant 0 : index
    %121 = vector.load %arg5[%c0_106, %c0_107, %c0_108, %c3_109, %c0_110] : memref<1x16x1x4x8xbf16, #tpu.memory_space<vmem>>, vector<1x16x1x1x8xbf16>
    %122 = vector.shape_cast %121 : vector<1x16x1x1x8xbf16> to vector<16x8xbf16>
    %c0_111 = arith.constant 0 : index
    %c0_112 = arith.constant 0 : index
    %c0_113 = arith.constant 0 : index
    %c3_114 = arith.constant 3 : index
    %c0_115 = arith.constant 0 : index
    %123 = vector.load %arg6[%c0_111, %c0_112, %c0_113, %c3_114, %c0_115] : memref<1x16x1x4x8xbf16, #tpu.memory_space<vmem>>, vector<1x16x1x1x8xbf16>
    %124 = vector.shape_cast %123 : vector<1x16x1x1x8xbf16> to vector<16x8xbf16>
    "tpu.trace_start"() <{level = 10 : i32, message = "qd,kd->qk"}> : () -> ()
    %cst_116 = arith.constant dense<0.000000e+00> : vector<8x16xf32>
    %125 = tpu.matmul %120, %122, %cst_116 {dimension_numbers = #tpu.dot_dimension_numbers<[1], [1], [0], [0], [0, 0, 1, 0], [], []>} : vector<8x8xbf16>, vector<16x8xbf16>, vector<8x16xf32> -> vector<8x16xf32>
    "tpu.trace_stop"() : () -> ()
    %126 = arith.mulf %125, %4 : vector<8x16xf32>
    %127 = arith.addf %126, %6 : vector<8x16xf32>
    %c0_117 = arith.constant 0 : index
    %c3_118 = arith.constant 3 : index
    %128 = vector.load %arg10[%c0_117, %c3_118] : memref<8x4xf32, #tpu.memory_space<vmem>>, vector<8x1xf32>
    %cst_119 = arith.constant dense<0xFF800000> : vector<8xf32>
    %129 = vector.multi_reduction <maximumf>, %127, %cst_119 [1] : vector<8x16xf32> to vector<8xf32>
    %130 = vector.shape_cast %129 : vector<8xf32> to vector<8x1xf32>
    %131 = arith.maximumf %128, %130 : vector<8x1xf32>
    %132 = arith.subf %128, %131 : vector<8x1xf32>
    %133 = math.exp %132 : vector<8x1xf32>
    %134 = vector.broadcast %131 : vector<8x1xf32> to vector<8x16xf32>
    %135 = arith.subf %127, %134 : vector<8x16xf32>
    %136 = math.exp %135 : vector<8x16xf32>
    %c0_120 = arith.constant 0 : index
    %c3_121 = arith.constant 3 : index
    %137 = vector.load %arg11[%c0_120, %c3_121] : memref<8x4xf32, #tpu.memory_space<vmem>>, vector<8x1xf32>
    %138 = arith.mulf %133, %137 : vector<8x1xf32>
    %cst_122 = arith.constant dense<0.000000e+00> : vector<8xf32>
    %139 = vector.multi_reduction <add>, %136, %cst_122 [1] : vector<8x16xf32> to vector<8xf32>
    %140 = vector.shape_cast %139 : vector<8xf32> to vector<8x1xf32>
    %141 = arith.addf %138, %140 : vector<8x1xf32>
    %142 = arith.truncf %136 : vector<8x16xf32> to vector<8x16xbf16>
    %cst_123 = arith.constant dense<0.000000e+00> : vector<8x8xf32>
    %143 = tpu.matmul %142, %124, %cst_123 {dimension_numbers = #tpu.dot_dimension_numbers<[1], [0], [0], [1], [0, 0, 1, 1], [], []>} : vector<8x16xbf16>, vector<16x8xbf16>, vector<8x8xf32> -> vector<8x8xf32>
    %c3_124 = arith.constant 3 : index
    %c0_125 = arith.constant 0 : index
    %c0_126 = arith.constant 0 : index
    %144 = vector.load %arg12[%c3_124, %c0_125, %c0_126] : memref<4x8x8xf32, #tpu.memory_space<vmem>>, vector<1x8x8xf32>
    %145 = vector.shape_cast %144 : vector<1x8x8xf32> to vector<8x8xf32>
    %146 = vector.broadcast %133 : vector<8x1xf32> to vector<8x8xf32>
    %147 = arith.mulf %146, %145 : vector<8x8xf32>
    %148 = arith.addf %147, %143 : vector<8x8xf32>
    %c0_127 = arith.constant 0 : index
    %c3_128 = arith.constant 3 : index
    %149 = vector.load %arg10[%c0_127, %c3_128] : memref<8x4xf32, #tpu.memory_space<vmem>>, vector<8x1xf32>
    tpu.vector_store %arg10[%c0_127, %c3_128], %131 {strides = array<i32>} : memref<8x4xf32, #tpu.memory_space<vmem>>, vector<8x1xf32>,
    %c0_129 = arith.constant 0 : index
    %c3_130 = arith.constant 3 : index
    %150 = vector.load %arg11[%c0_129, %c3_130] : memref<8x4xf32, #tpu.memory_space<vmem>>, vector<8x1xf32>
    tpu.vector_store %arg11[%c0_129, %c3_130], %141 {strides = array<i32>} : memref<8x4xf32, #tpu.memory_space<vmem>>, vector<8x1xf32>,
    %c3_131 = arith.constant 3 : index
    %c0_132 = arith.constant 0 : index
    %c0_133 = arith.constant 0 : index
    %151 = vector.load %arg12[%c3_131, %c0_132, %c0_133] : memref<4x8x8xf32, #tpu.memory_space<vmem>>, vector<1x8x8xf32>
    %152 = vector.shape_cast %151 : vector<1x8x8xf32> to vector<8x8xf32>
    %153 = vector.shape_cast %148 : vector<8x8xf32> to vector<1x8x8xf32>
    tpu.vector_store %arg12[%c3_131, %c0_132, %c0_133], %153 {strides = array<i32>} : memref<4x8x8xf32, #tpu.memory_space<vmem>>, vector<1x8x8xf32>,
    %154 = arith.extui %7 : i1 to i32
    %c0_i32_134 = arith.constant 0 : i32
    %155 = arith.cmpi ne, %154, %c0_i32_134 : i32
    scf.if %155 {
      %156 = tpu.reciprocal %141 {approx = true} : vector<8x1xf32> -> vector<8x1xf32>
      %157 = vector.broadcast %156 : vector<8x1xf32> to vector<8x8xf32>
      %158 = arith.mulf %148, %157 : vector<8x8xf32>
      %159 = arith.truncf %158 : vector<8x8xf32> to vector<8x8xbf16>
      %c0_135 = arith.constant 0 : index
      %c0_136 = arith.constant 0 : index
      %c24 = arith.constant 24 : index
      %160 = vector.load %arg9[%c0_135, %c0_136, %c24] : memref<1x8x32xbf16, #tpu.memory_space<vmem>>, vector<1x8x8xbf16>
      %161 = vector.shape_cast %160 : vector<1x8x8xbf16> to vector<8x8xbf16>
      %162 = vector.shape_cast %159 : vector<8x8xbf16> to vector<1x8x8xbf16>
      tpu.vector_store %arg9[%c0_135, %c0_136, %c24], %162 {strides = array<i32>} : memref<1x8x32xbf16, #tpu.memory_space<vmem>>, vector<1x8x8xbf16>,
    } else {
    }
    return
  }
  func.func @transform_0(%arg0: i32, %arg1: i32, %arg2: i32, %arg3: i32) -> (i32, i32, i32, i32) {
    %c0_i32 = arith.constant 0 : i32
    %c0_i32_0 = arith.constant 0 : i32
    return %arg0, %arg2, %arg1, %c0_i32 : i32, i32, i32, i32
  }
  func.func @transform_1(%arg0: i32, %arg1: i32, %arg2: i32, %arg3: i32) -> (i32, i32, i32, i32, i32) {
    %c0_i32 = arith.constant 0 : i32
    %c0_i32_0 = arith.constant 0 : i32
    %c0_i32_1 = arith.constant 0 : i32
    return %arg0, %arg3, %c0_i32, %arg1, %c0_i32_0 : i32, i32, i32, i32, i32
  }
  func.func @transform_2(%arg0: i32, %arg1: i32, %arg2: i32, %arg3: i32) -> (i32, i32, i32, i32, i32) {
    %c1_i32 = arith.constant 1 : i32
    %c0_i32 = arith.constant 0 : i32
    %c0_i32_0 = arith.constant 0 : i32
    return %arg0, %arg3, %c1_i32, %arg1, %c0_i32 : i32, i32, i32, i32, i32
  }
  func.func @transform_3(%arg0: i32, %arg1: i32, %arg2: i32, %arg3: i32) -> (i32, i32, i32) {
    %c0_i32 = arith.constant 0 : i32
    return %arg0, %arg2, %arg3 : i32, i32, i32
  }
  func.func @transform_4(%arg0: i32, %arg1: i32, %arg2: i32, %arg3: i32) -> (i32, i32, i32) {
    %c0_i32 = arith.constant 0 : i32
    return %arg0, %arg2, %arg3 : i32, i32, i32
  }
  func.func @transform_5(%arg0: i32, %arg1: i32, %arg2: i32, %arg3: i32) -> (i32, i32, i32) {
    %c0_i32 = arith.constant 0 : i32
    return %arg0, %arg2, %arg1 : i32, i32, i32
  }
}

module attributes {stable_mosaic.version = 11 : i64} {
  func.func @_linear_kernel(%arg0: i32, %arg1: i32, %arg2: i32, %arg3: memref<16x32xbf16, #tpu.memory_space<vmem>>, %arg4: memref<32x32xbf16, #tpu.memory_space<vmem>>, %arg5: memref<1x32xf32, #tpu.memory_space<vmem>>, %arg6: memref<16x32xf32, #tpu.memory_space<vmem>>, %arg7: memref<16x32xf32, #tpu.memory_space<vmem>>) attributes {dimension_semantics = [#tpu.dimension_semantics<parallel>, #tpu.dimension_semantics<parallel>, #tpu.dimension_semantics<arbitrary>], iteration_bounds = array<i64: 1, 1, 1>, scalar_prefetch = 0 : i64, scratch_operands = 1 : i64, tpu.core_type = #tpu.core_type<tc>, window_params = [{transform_indices = @transform_0, window_bounds = array<i64: 16, 32>}, {transform_indices = @transform_1, window_bounds = array<i64: 32, 32>}, {transform_indices = @transform_2, window_bounds = array<i64: 1, 32>}, {transform_indices = @transform_3, window_bounds = array<i64: 16, 32>}]} {
    %c0_i32 = arith.constant 0 : i32
    %0 = arith.cmpi eq, %arg2, %c0_i32 : i32
    %1 = arith.extui %0 : i1 to i32
    %c0_i32_0 = arith.constant 0 : i32
    %2 = arith.cmpi ne, %1, %c0_i32_0 : i32
    scf.if %2 {
      %cst_10 = arith.constant 0.000000e+00 : f32
      %12 = vector.broadcast %cst_10 : f32 to vector<16x32xf32>
      %c0_11 = arith.constant 0 : index
      %c0_12 = arith.constant 0 : index
      %13 = vector.load %arg7[%c0_11, %c0_12] : memref<16x32xf32, #tpu.memory_space<vmem>>, vector<16x32xf32>
      tpu.vector_store %arg7[%c0_11, %c0_12], %12 {strides = array<i32>} : memref<16x32xf32, #tpu.memory_space<vmem>>, vector<16x32xf32>,
    } else {
    }
    %c0 = arith.constant 0 : index
    %c0_1 = arith.constant 0 : index
    %3 = vector.load %arg7[%c0, %c0_1] : memref<16x32xf32, #tpu.memory_space<vmem>>, vector<16x32xf32>
    %c0_2 = arith.constant 0 : index
    %c0_3 = arith.constant 0 : index
    %4 = vector.load %arg3[%c0_2, %c0_3] : memref<16x32xbf16, #tpu.memory_space<vmem>>, vector<16x32xbf16>
    %c0_4 = arith.constant 0 : index
    %c0_5 = arith.constant 0 : index
    %5 = vector.load %arg4[%c0_4, %c0_5] : memref<32x32xbf16, #tpu.memory_space<vmem>>, vector<32x32xbf16>
    %cst = arith.constant dense<0.000000e+00> : vector<16x32xf32>
    %6 = tpu.matmul %4, %5, %cst {dimension_numbers = #tpu.dot_dimension_numbers<[1], [0], [0], [1], [0, 0, 1, 1], [], []>} : vector<16x32xbf16>, vector<32x32xbf16>, vector<16x32xf32> -> vector<16x32xf32>
    %7 = arith.addf %3, %6 : vector<16x32xf32>
    %c0_6 = arith.constant 0 : index
    %c0_7 = arith.constant 0 : index
    %8 = vector.load %arg7[%c0_6, %c0_7] : memref<16x32xf32, #tpu.memory_space<vmem>>, vector<16x32xf32>
    tpu.vector_store %arg7[%c0_6, %c0_7], %7 {strides = array<i32>} : memref<16x32xf32, #tpu.memory_space<vmem>>, vector<16x32xf32>,
    %c0_i32_8 = arith.constant 0 : i32
    %9 = arith.cmpi eq, %arg2, %c0_i32_8 : i32
    %10 = arith.extui %9 : i1 to i32
    %c0_i32_9 = arith.constant 0 : i32
    %11 = arith.cmpi ne, %10, %c0_i32_9 : i32
    scf.if %11 {
      %c0_10 = arith.constant 0 : index
      %c0_11 = arith.constant 0 : index
      %12 = vector.load %arg7[%c0_10, %c0_11] : memref<16x32xf32, #tpu.memory_space<vmem>>, vector<16x32xf32>
      %c0_12 = arith.constant 0 : index
      %c0_13 = arith.constant 0 : index
      %13 = vector.load %arg5[%c0_12, %c0_13] : memref<1x32xf32, #tpu.memory_space<vmem>>, vector<1x32xf32>
      %14 = vector.broadcast %13 : vector<1x32xf32> to vector<16x32xf32>
      %15 = arith.addf %12, %14 : vector<16x32xf32>
      %c0_14 = arith.constant 0 : index
      %c0_15 = arith.constant 0 : index
      %16 = vector.load %arg6[%c0_14, %c0_15] : memref<16x32xf32, #tpu.memory_space<vmem>>, vector<16x32xf32>
      tpu.vector_store %arg6[%c0_14, %c0_15], %15 {strides = array<i32>} : memref<16x32xf32, #tpu.memory_space<vmem>>, vector<16x32xf32>,
    } else {
    }
    return
  }
  func.func @transform_0(%arg0: i32, %arg1: i32, %arg2: i32) -> (i32, i32) {
    %c0_i32 = arith.constant 0 : i32
    return %arg0, %arg2 : i32, i32
  }
  func.func @transform_1(%arg0: i32, %arg1: i32, %arg2: i32) -> (i32, i32) {
    %c0_i32 = arith.constant 0 : i32
    return %arg2, %arg1 : i32, i32
  }
  func.func @transform_2(%arg0: i32, %arg1: i32, %arg2: i32) -> (i32, i32) {
    %c0_i32 = arith.constant 0 : i32
    %c0_i32_0 = arith.constant 0 : i32
    return %c0_i32, %arg1 : i32, i32
  }
  func.func @transform_3(%arg0: i32, %arg1: i32, %arg2: i32) -> (i32, i32) {
    %c0_i32 = arith.constant 0 : i32
    return %arg0, %arg1 : i32, i32
  }
}

</mosaic_0001>

<bundles_post_ra>
// kernel: _lambda_.4
= control target key start
LH: loop header
LB: loop body
LE: loop exit
PB: predicated region body
PF: predicated region fallthrough
CT: control target
= control target key end

     0   :  { %vm19_vm0 = vcmask 261120   ;;  %v144_v0 = vmov 0.0   ;;  %vm145_vm1 = vmmov 0   ;;  %vm114_vm2 = vcmask 257024   ;;  %s192_s1 = inlined_call_operand.vmem [shape: bf16[32,32], index: 1, kind: input, shape index: {}]   ;;  %s193_s0 = inlined_call_operand.vmem [shape: f32[16,32], index: 0, kind: input, shape index: {}]   ;;  %s194_s2 = inlined_call_operand.vmem [shape: f32[1,32], index: 2, kind: input, shape index: {}]   ;;  %s195_s3 = inlined_call_operand.vmem [shape: bf16[16,32], index: 3, kind: output, shape index: {}]  }
   0x1   :  { %132 = vmatprep.subr.bf16.mxu0 %v144_v0  ;;  %v142_v1 = vld [vmem:[%s192_s1 + $0x8] sm:$0xff]   ;;  %136 = vmatprep.mubr.msk.bf16.mxu0 %vm145_vm1, %v144_v0  ;;  %20 = vst.msk [vmem:[#allocation2] sm:$0xff] %vm19_vm0, %v144_v0  ;;  %21 = vst.msk [vmem:[#allocation2 + $0x8] sm:$0xff] %vm19_vm0, %v144_v0  ;;  %v143_v2 = vld [vmem:[%s192_s1] sm:$0xff]  }
   0x2   :  { %133 = vmatpush3.bf16.msra.mxu0 %v142_v1  ;;  %v24_v3 = vld [vmem:[%s193_s0] sm:$0xff]  ;;  %v25_v4 = vld [vmem:[%s193_s0 + $0x8] sm:$0xff] }
   0x3   :  { %134 = vmatprep.subr.bf16.mxu0 %v144_v0  ;;  %v26_v5 = vpack.c.bf16 %v25_v4, %v24_v3  ;;  %v124_v14 = vld [vmem:[%s194_s2] ss:$0 sm:$0xff] }
   0x6   :  { %135 = vmatpush3.bf16.msra.mxu0 %v143_v2 }
   0x8   :  { %v22_v6 = vld [vmem:[#allocation2] sm:$0xff]  ;;  %v23_v10 = vld [vmem:[#allocation2 + $0x8] sm:$0xff] }
   0x9   :  { %137 = vmatmul.mubr.msk.bf16.vlgmr.msra.gmra.mxu0 %vm19_vm0, %v26_v5 }
  0xc9   :  { %v81_v7 = vpop.f32.mrf.mxu0 }
  0xca   :  { %v88_v8 = vadd.f32 %v81_v7, %v22_v6 }
  0xcb   :  { %v138_v9 = vpop.f32.mrf.mxu0 }
  0xcc   :  { %90 = vst.msk [vmem:[#allocation2] sm:$0xff] %vm19_vm0, %v88_v8 }
  0xcd   :  { %v84_v11 = vpop.f32.mrf.mxu0 }
  0xce   :  { %v89_v12 = vadd.f32 %v84_v11, %v23_v10 }
  0xcf   :  { %v139_v13 = vpop.f32.mrf.mxu0 }
  0xd0   :  { %91 = vst.msk [vmem:[#allocation2 + $0x8] sm:$0xff] %vm19_vm0, %v89_v12 }
  0xd3   :  { %v95_v15 = vld [vmem:[#allocation2] sm:$0xff] }
  0xd4   :  { %v104_v16 = vadd.f32 %v124_v14, %v95_v15 }
  0xd6   :  { %v127_v17 = vpack.c.bf16 %v104_v16, %v104_v16 }
  0xd7   :  { %v96_v18 = vld [vmem:[#allocation2 + $0x8] sm:$0xff] }
  0xd8   :  { %115 = vst.msk [vmem:[%s195_s3] sm:$0xf] %vm114_vm2, %v127_v17  ;;  %v105_v19 = vadd.f32 %v124_v14, %v96_v18 }
  0xda   :  { %v128_v20 = vpack.c.bf16 %v105_v19, %v105_v19 }
  0xdc   :  { %116 = vst.msk [vmem:[%s195_s3 + $0x4] sm:$0xf] %vm114_vm2, %v128_v20 }

// kernel: _lambda_.5
= control target key start
LH: loop header
LB: loop body
LE: loop exit
PB: predicated region body
PF: predicated region fallthrough
CT: control target
= control target key end

     0   :  { %8 = vsyncpa [#allocation4], 0  ;;  %s319_s0 = inlined_call_operand.hbm [shape: f32[32,32], index: 0, kind: input, shape index: {}]   ;;  %s320_s1 = inlined_call_operand.vmem [shape: bf16[32,64], index: 1, kind: input, shape index: {}]   ;;  %s321_s2 = inlined_call_operand.hbm [shape: f32[1,64], index: 2, kind: input, shape index: {}]   ;;  %s322_s3 = inlined_call_operand.vmem [shape: bf16[32,64], index: 3, kind: output, shape index: {}]  }
   0x1   :  { %9 = vsyncpa [#allocation6], 0  ;;  %s262_s12 = smov [#allocation3]  }
   0x2   :  { %s15_s13 = sshll.u32 %s262_s12, 4  ;;  %s16_s13 = int_to_ptr.vmem [resolvable:$true] %s15_s13 }
   0x3   :  { %s226_s14 = scalar_lea.vmem %s16_s13, 512  ;;  %p231_p1 = scmp.lt.s32.totalorder %s16_s13, %s16_s13 }
   0x4   :  { %p227_p0 = scmp.ne.s32.totalorder %s16_s13, %s226_s14  ;;  %p232_p2 = scmp.lt.s32.totalorder %s226_s14, %s226_s14 }
   0x6   :  { %p233_p3 = por %p232_p2, %p231_p1 }
   0x8   :  { %p234_p4 = pnand %p233_p3, %p227_p0 }
   0xa   :  { %237 = shalt.err (!%p234_p4)
}
   0xb   :  { %s263_s15 = smov 128   ;;  %s264_s16 = smov 8  }
   0xc   :  { %21 = dma.hbm_to_vmem [thread:$0]  %s319_s0, 512, %s16_s13, [#allocation4], %s263_s15, %s263_s15, %s264_s16  }
   0xd   :  { %s265_s19 = smov [#allocation5]  }
   0xe   :  { %s30_s20 = sshll.u32 %s265_s19, 4  ;;  %s31_s20 = int_to_ptr.vmem [resolvable:$true] %s30_s20 }
   0xf   :  { %s246_s21 = scalar_lea.vmem %s31_s20, 16  ;;  %s250_s22 = scalar_lea.vmem %s31_s20, 32 }
  0x10   :  { %p247_p5 = scmp.ne.s32.totalorder %s31_s20, %s246_s21  ;;  %p251_p6 = scmp.lt.s32.totalorder %s31_s20, %s31_s20 }
  0x11   :  { %p252_p7 = scmp.lt.s32.totalorder %s250_s22, %s246_s21 }
  0x13   :  { %p253_p8 = por %p252_p7, %p251_p6 }
  0x15   :  { %p254_p9 = pnand %p253_p8, %p247_p5 }
  0x17   :  { %257 = shalt.err (!%p254_p9)
}
  0x18   :  { %33 = dma.hbm_to_vmem [thread:$0]  %s321_s2, 16, %s31_s20, [#allocation6]  }
  0x19   :  { %258 = dma.done.wait [#allocation4], 512  }
  0x1a   :  { %259 = vsyncadd [#allocation4], 4294966784 }
  0x1b   :  { %260 = dma.done.wait [#allocation6], 16  }
  0x1c   :  { %261 = vsyncadd [#allocation6], 4294967280  ;;  %vm45_vm0 = vcmask 523264   ;;  %v266_v0 = vmov 0.0   ;;  %v216_v1 = vld [vmem:[%s320_s1 + $0x8] sm:$0xff]   ;;  %v217_v2 = vld [vmem:[%s320_s1] sm:$0xff]  }
  0x1d   :  { %48 = vst.msk [vmem:[#allocation2 + $0x10] sm:$0xff] %vm45_vm0, %v266_v0  ;;  %46 = vst.msk [vmem:[#allocation2] sm:$0xff] %vm45_vm0, %v266_v0  ;;  %203 = vmatprep.subr.bf16.mxu0 %v216_v1  ;;  %v54_v3 = vld [vmem:[#allocation3] sm:$0xff]  ;;  %v55_v4 = vld [vmem:[#allocation3 + $0x8] sm:$0xff]  ;;  %vm76_vm1 = vcmask 261120   ;;  %vm175_vm2 = vcmask 519168  }
  0x1e   :  { %47 = vst.msk [vmem:[#allocation2 + $0x8] sm:$0xff] %vm45_vm0, %v266_v0  ;;  %49 = vst.msk [vmem:[#allocation2 + $0x18] sm:$0xff] %vm45_vm0, %v266_v0  ;;  %204 = vmatpush3.bf16.msra.mxu0 %v216_v1  ;;  %v58_v5 = vpack.c.bf16 %v55_v4, %v54_v3  ;;  %v56_v6 = vld [vmem:[#allocation3 + $0x10] sm:$0xff]  ;;  %v57_v7 = vld [vmem:[#allocation3 + $0x18] sm:$0xff] }
  0x1f   :  { %205 = vmatprep.subr.bf16.mxu0 %v217_v2  ;;  %v59_v8 = vpack.c.bf16 %v57_v7, %v56_v6  ;;  %v190_v21 = vld [vmem:[#allocation5] ss:$0 sm:$0xff] }
  0x20   :  { %207 = vmatprep.mubr.msk.bf16.mxu0 %vm76_vm1, %v58_v5 }
  0x22   :  { %206 = vmatpush3.bf16.msra.mxu0 %v217_v2 }
  0x24   :  { %v52_v9 = vld [vmem:[#allocation2 + $0x10] sm:$0xff]  ;;  %v50_v11 = vld [vmem:[#allocation2] sm:$0xff] }
  0x25   :  { %208 = vmatmul.mubr.msk.bf16.vlgmr.msra.gmra.mxu0 %vm76_vm1, %v59_v8  ;;  %v53_v14 = vld [vmem:[#allocation2 + $0x18] sm:$0xff]  ;;  %v51_v17 = vld [vmem:[#allocation2 + $0x8] sm:$0xff] }
  0xe5   :  { %v209_v10 = vpop.f32.mrf.mxu0 }
  0xe6   :  { %v134_v12 = vadd.f32 %v209_v10, %v52_v9 }
  0xe7   :  { %v117_v13 = vpop.f32.mrf.mxu0 }
  0xe8   :  { %139 = vst.msk [vmem:[#allocation2 + $0x10] sm:$0xff] %vm45_vm0, %v134_v12  ;;  %v132_v15 = vadd.f32 %v117_v13, %v50_v11 }
  0xe9   :  { %v210_v16 = vpop.f32.mrf.mxu0 }
  0xea   :  { %137 = vst.msk [vmem:[#allocation2] sm:$0xff] %vm45_vm0, %v132_v15  ;;  %v135_v18 = vadd.f32 %v210_v16, %v53_v14 }
  0xeb   :  { %v120_v19 = vpop.f32.mrf.mxu0 }
  0xec   :  { %140 = vst.msk [vmem:[#allocation2 + $0x18] sm:$0xff] %vm45_vm0, %v135_v18  ;;  %v133_v20 = vadd.f32 %v120_v19, %v51_v17 }
  0xee   :  { %138 = vst.msk [vmem:[#allocation2 + $0x8] sm:$0xff] %vm45_vm0, %v133_v20 }
  0xef   :  { %v146_v22 = vld [vmem:[#allocation2 + $0x10] sm:$0xff] }
  0xf0   :  { %v157_v23 = vadd.f32 %v190_v21, %v146_v22 }
  0xf1   :  { %v144_v24 = vld [vmem:[#allocation2] sm:$0xff] }
  0xf2   :  { %v197_v25 = vpack.c.bf16 %v157_v23, %v157_v23  ;;  %v155_v26 = vadd.f32 %v190_v21, %v144_v24 }
  0xf3   :  { %v147_v27 = vld [vmem:[#allocation2 + $0x18] sm:$0xff] }
  0xf4   :  { %178 = vst.msk [vmem:[%s322_s3 + $0x8] sm:$0xf] %vm175_vm2, %v197_v25  ;;  %v195_v28 = vpack.c.bf16 %v155_v26, %v155_v26  ;;  %v158_v29 = vadd.f32 %v190_v21, %v147_v27 }
  0xf5   :  { %v145_v30 = vld [vmem:[#allocation2 + $0x8] sm:$0xff] }
  0xf6   :  { %176 = vst.msk [vmem:[%s322_s3] sm:$0xf] %vm175_vm2, %v195_v28  ;;  %v198_v31 = vpack.c.bf16 %v158_v29, %v158_v29  ;;  %v156_v32 = vadd.f32 %v190_v21, %v145_v30 }
  0xf8   :  { %179 = vst.msk [vmem:[%s322_s3 + $0xc] sm:$0xf] %vm175_vm2, %v198_v31  ;;  %v196_v33 = vpack.c.bf16 %v156_v32, %v156_v32 }
  0xfa   :  { %177 = vst.msk [vmem:[%s322_s3 + $0x4] sm:$0xf] %vm175_vm2, %v196_v33 }
  0xfb   :  { %184 = vsyncpa [#allocation4], 1 }
  0xfc   :  { %185 = vsyncpa [#allocation6], 1 }

// kernel: _lambda_.7
= control target key start
LH: loop header
LB: loop body
LE: loop exit
PB: predicated region body
PF: predicated region fallthrough
CT: control target
= control target key end

     0   :  { %v175_v1 = vmov 0.0   ;;  %vm176_vm0 = vmmov 0   ;;  %vm20_vm1 = vcmask 261120   ;;  %s222_s0 = inlined_call_operand.vmem [shape: bf16[16,32], index: 0, kind: input, shape index: {}]   ;;  %s223_s1 = inlined_call_operand.vmem [shape: bf16[32,32], index: 1, kind: input, shape index: {}]   ;;  %s224_s2 = inlined_call_operand.vmem [shape: f32[1,32], index: 2, kind: input, shape index: {}]   ;;  %s225_s3 = inlined_call_operand.hbm [shape: f32[16,32], index: 3, kind: output, shape index: {}]  }
   0x1   :  { %v150_v0 = vld [vmem:[%s223_s1 + $0x8] sm:$0xff]   ;;  %137 = vmatprep.subr.bf16.mxu0 %v175_v1  ;;  %v151_v2 = vld [vmem:[%s223_s1] sm:$0xff]   ;;  %141 = vmatprep.mubr.msk.bf16.mxu0 %vm176_vm0, %v175_v1  ;;  %21 = vst.msk [vmem:[#allocation2] sm:$0xff] %vm20_vm1, %v175_v1  ;;  %22 = vst.msk [vmem:[#allocation2 + $0x8] sm:$0xff] %vm20_vm1, %v175_v1 }
   0x2   :  { %138 = vmatpush3.bf16.msra.mxu0 %v150_v0 }
   0x3   :  { %139 = vmatprep.subr.bf16.mxu0 %v175_v1 }
   0x4   :  { %8 = vsyncpa [#allocation4], 0  ;;  %v152_v3 = vld [vmem:[%s222_s0] sm:$0xff]   ;;  %s177_s0 = smov [#allocation3]  }
   0x5   :  { %v133_v12 = vld [vmem:[%s224_s2] ss:$0 sm:$0xff]  ;;  %s118_s19 = sshll.u32 %s177_s0, 4  ;;  %s119_s19 = int_to_ptr.vmem [resolvable:$true] %s118_s19 }
   0x6   :  { %140 = vmatpush3.bf16.msra.mxu0 %v151_v2  ;;  %s153_s20 = scalar_lea.vmem %s119_s19, 256  ;;  %p158_p1 = scmp.lt.s32.totalorder %s119_s19, %s119_s19 }
   0x7   :  { %p154_p0 = scmp.ne.s32.totalorder %s119_s19, %s153_s20  ;;  %p159_p2 = scmp.lt.s32.totalorder %s153_s20, %s153_s20 }
   0x8   :  { %v23_v4 = vld [vmem:[#allocation2] sm:$0xff]  ;;  %v24_v8 = vld [vmem:[#allocation2 + $0x8] sm:$0xff] }
   0x9   :  { %142 = vmatmul.mubr.msk.bf16.vlgmr.msra.gmra.mxu0 %vm20_vm1, %v152_v3  ;;  %p160_p3 = por %p159_p2, %p158_p1 }
   0xb   :  { %p161_p4 = pnand %p160_p3, %p154_p0 }
  0xc9   :  { %v86_v5 = vpop.f32.mrf.mxu0 }
  0xca   :  { %v93_v6 = vadd.f32 %v86_v5, %v23_v4 }
  0xcb   :  { %v143_v7 = vpop.f32.mrf.mxu0 }
  0xcc   :  { %95 = vst.msk [vmem:[#allocation2] sm:$0xff] %vm20_vm1, %v93_v6 }
  0xcd   :  { %v89_v9 = vpop.f32.mrf.mxu0 }
  0xce   :  { %v94_v10 = vadd.f32 %v89_v9, %v24_v8 }
  0xcf   :  { %v144_v11 = vpop.f32.mrf.mxu0 }
  0xd0   :  { %96 = vst.msk [vmem:[#allocation2 + $0x8] sm:$0xff] %vm20_vm1, %v94_v10 }
  0xd3   :  { %v100_v13 = vld [vmem:[#allocation2] sm:$0xff] }
  0xd4   :  { %v109_v14 = vadd.f32 %v133_v12, %v100_v13 }
  0xd6   :  { %111 = vst.msk [vmem:[#allocation3] sm:$0xff] %vm20_vm1, %v109_v14 }
  0xd7   :  { %v101_v15 = vld [vmem:[#allocation2 + $0x8] sm:$0xff] }
  0xd8   :  { %v110_v16 = vadd.f32 %v133_v12, %v101_v15 }
  0xda   :  { %112 = vst.msk [vmem:[#allocation3 + $0x8] sm:$0xff] %vm20_vm1, %v110_v16 }
  0xdb   :  { %164 = shalt.err (!%p161_p4)
}
  0xdc   :  { %s178_s21 = smov 128   ;;  %s179_s2 = smov 8  }
  0xdd   :  { %124 = dma.vmem_to_hbm [thread:$0]  %s119_s19, 256, %s225_s3, [#allocation4], %s178_s21, %s178_s21, %s179_s2  }
  0xde   :  { %173 = dma.done.wait [#allocation4], 256  }
  0xdf   :  { %174 = vsyncadd [#allocation4], 4294967040 }
  0xe0   :  { %128 = vsyncpa [#allocation4], 1 }

// kernel: _lambda_.6
= control target key start
LH: loop header
LB: loop body
LE: loop exit
PB: predicated region body
PF: predicated region fallthrough
CT: control target
= control target key end

     0   :  { %s3752_s18 = smov 0   ;;  %s3754_s19 = smov 0   ;;  %s4662_s0 = inlined_call_operand.vmem [shape: bf16[2,8,4,8], index: 0, kind: input, shape index: {}]   ;;  %s4663_s1 = inlined_call_operand.vmem [shape: bf16[2,16,2,4,8], index: 1, kind: input, shape index: {}, may-alias: {1,2}]   ;;  %s4664_s2 = inlined_call_operand.vmem [shape: bf16[2,16,2,4,8], index: 2, kind: input, shape index: {}, may-alias: {1,2}]   ;;  %s4665_s3 = inlined_call_operand.vmem [shape: f32[2,8,16], index: 3, kind: input, shape index: {}]   ;;  %s4666_s4 = inlined_call_operand.vmem [shape: f32[2,8,16], index: 4, kind: input, shape index: {}]   ;;  %s4667_s5 = inlined_call_operand.vmem [shape: bf16[2,8,32], index: 5, kind: output, shape index: {}]  }
   0x1   :  { %s3756_s20 = smov 0   ;;  %s3758_s21 = smov 0  }
   0x2   :  { %s3760_s22 = smov 0  }
   0x3 LB: > { %s41_s23 = sadd.s32 1, %s3706_s21  ;;  %p89_p1 = scmp.ne.s32.totalorder %s3698_s19, %s3694_s18  ;;  %s3710_s22 = sphi %s3760_s22, %s15_s22   ;;  %s3706_s21 = sphi %s3758_s21, %s4780_s21   ;;  %s3702_s20 = sphi %s3756_s20, %s4779_s20   ;;  %s3698_s19 = sphi %s3754_s19, %s4778_s19   ;;  %s3694_s18 = sphi %s3752_s18, %s4777_s18  }
   0x4   : > { %p43_p0 = scmp.ge.s32.totalorder %s41_s23, 2  ;;  %p90_p2 = scmp.eq.s32.totalorder %s3710_s22, 0 }
   0x5   : > { %s82_s26 = sadd.s32 1, %s3698_s19  ;;  %p3314_p5 = scmp.ge.s32.totalorder %s3710_s22, 2 }
   0x6   : > { %s4782_s23 = smov (%p43_p0, %s41_s23), 0  ;;  %p3783_p3 = por %p90_p2, %p89_p1 }
   0x7   : > { %s75_s25 = ssub.s32 %s3706_s21, %s4782_s23  ;;  %235 = sbr.rel (%p3314_p5) target bundleno = 40 (0x28), region = 16 }
   0x8   : > { %p80_p4 = scmp.eq.s32.totalorder %s75_s25, 0 }
   0xa   : > { %s3791_s27 = scalar_select %p80_p4, %s3698_s19, %s82_s26  }
   0xc   : > { %254 = sbr.rel (!%p3783_p3) target bundleno = 26 (0x1a), region = 24  ;;  %s256_s28 = sand.u32 (%p3783_p3), 1, %s3698_s19  }
   0xd   : > { %s3518_s29 = sshll.u32 (%p3783_p3), %s3706_s21, 6  ;;  %s3315_s30 = sshll.u32 (%p3783_p3), %s256_s28, 5 }
   0xe   : > { %s3801_s8 = scalar_lea.vmem (%p3783_p3), %s4663_s1, %s3518_s29  ;;  %s258_s9 = scalar_lea.vmem (%p3783_p3), [#allocation5], %s3315_s30 }
   0xf   : > { %v282_v0 = vld [vmem:[%s3801_s8] sm:$0x3] (%p3783_p3)  ;;  %v284_v1 = vld [vmem:[%s3801_s8 + $0x4] sm:$0x3] (%p3783_p3)  ;;  %v286_v2 = vld [vmem:[%s3801_s8 + $0x8] sm:$0x3] (%p3783_p3) }
  0x10   : > { %283 = vst [vmem:[%s258_s9] sm:$0x3] (%p3783_p3), %v282_v0  ;;  %285 = vst [vmem:[%s258_s9 + $0x2] sm:$0x3] (%p3783_p3), %v284_v1  ;;  %v288_v3 = vld [vmem:[%s3801_s8 + $0xc] sm:$0x3] (%p3783_p3) }
  0x11   : > { %v290_v4 = vld [vmem:[%s3801_s8 + $0x10] sm:$0x3]  ;;  %287 = vst [vmem:[%s258_s9 + $0x4] sm:$0x3] %v286_v2  ;;  %289 = vst [vmem:[%s258_s9 + $0x6] sm:$0x3] %v288_v3 }
  0x12   : > { %291 = vst [vmem:[%s258_s9 + $0x8] sm:$0x3] %v290_v4  ;;  %v292_v5 = vld [vmem:[%s3801_s8 + $0x14] sm:$0x3]  ;;  %v294_v6 = vld [vmem:[%s3801_s8 + $0x18] sm:$0x3] }
  0x13   : > { %v296_v7 = vld [vmem:[%s3801_s8 + $0x1c] sm:$0x3]  ;;  %293 = vst [vmem:[%s258_s9 + $0xa] sm:$0x3] %v292_v5  ;;  %295 = vst [vmem:[%s258_s9 + $0xc] sm:$0x3] %v294_v6 }
  0x14   : > { %297 = vst [vmem:[%s258_s9 + $0xe] sm:$0x3] %v296_v7  ;;  %v298_v8 = vld [vmem:[%s3801_s8 + $0x20] sm:$0x3]  ;;  %v300_v9 = vld [vmem:[%s3801_s8 + $0x24] sm:$0x3] }
  0x15   : > { %v302_v10 = vld [vmem:[%s3801_s8 + $0x28] sm:$0x3]  ;;  %299 = vst [vmem:[%s258_s9 + $0x10] sm:$0x3] %v298_v8  ;;  %301 = vst [vmem:[%s258_s9 + $0x12] sm:$0x3] %v300_v9 }
  0x16   : > { %303 = vst [vmem:[%s258_s9 + $0x14] sm:$0x3] %v302_v10  ;;  %v304_v11 = vld [vmem:[%s3801_s8 + $0x2c] sm:$0x3]  ;;  %v306_v12 = vld [vmem:[%s3801_s8 + $0x30] sm:$0x3] }
  0x17   : > { %v308_v13 = vld [vmem:[%s3801_s8 + $0x34] sm:$0x3]  ;;  %305 = vst [vmem:[%s258_s9 + $0x16] sm:$0x3] %v304_v11  ;;  %307 = vst [vmem:[%s258_s9 + $0x18] sm:$0x3] %v306_v12 }
  0x18   : > { %309 = vst [vmem:[%s258_s9 + $0x1a] sm:$0x3] %v308_v13  ;;  %v310_v14 = vld [vmem:[%s3801_s8 + $0x38] sm:$0x3]  ;;  %v312_v15 = vld [vmem:[%s3801_s8 + $0x3c] sm:$0x3] }
  0x19   : > { %311 = vst [vmem:[%s258_s9 + $0x1c] sm:$0x3] %v310_v14  ;;  %313 = vst [vmem:[%s258_s9 + $0x1e] sm:$0x3] %v312_v15 }
  0x1a PF: > { %369 = sbr.rel (!%p3783_p3) target bundleno = 40 (0x28), region = 65  ;;  %s371_s10 = sand.u32 (%p3783_p3), 1, %s3698_s19  }
  0x1b   : > { %s3519_s11 = sshll.u32 (%p3783_p3), %s3706_s21, 6  ;;  %s3318_s12 = sshll.u32 (%p3783_p3), %s371_s10, 5 }
  0x1c   : > { %s3826_s15 = scalar_lea.vmem (%p3783_p3), %s4664_s2, %s3519_s11  ;;  %s373_s16 = scalar_lea.vmem (%p3783_p3), [#allocation6], %s3318_s12 }
  0x1d   : > { %v3321_v16 = vld [vmem:[%s3826_s15 + $0x2] sm:$0x3] (%p3783_p3)  ;;  %v3322_v17 = vld [vmem:[%s3826_s15 + $0x6] sm:$0x3] (%p3783_p3)  ;;  %v3323_v18 = vld [vmem:[%s3826_s15 + $0xa] sm:$0x3] (%p3783_p3) }
  0x1e   : > { %399 = vst [vmem:[%s373_s16] sm:$0x3] (%p3783_p3), %v3321_v16  ;;  %401 = vst [vmem:[%s373_s16 + $0x2] sm:$0x3] (%p3783_p3), %v3322_v17  ;;  %v3324_v19 = vld [vmem:[%s3826_s15 + $0xe] sm:$0x3] (%p3783_p3) }
  0x1f   : > { %v3325_v20 = vld [vmem:[%s3826_s15 + $0x12] sm:$0x3]  ;;  %403 = vst [vmem:[%s373_s16 + $0x4] sm:$0x3] %v3323_v18  ;;  %405 = vst [vmem:[%s373_s16 + $0x6] sm:$0x3] %v3324_v19 }
  0x20   : > { %407 = vst [vmem:[%s373_s16 + $0x8] sm:$0x3] %v3325_v20  ;;  %v3326_v21 = vld [vmem:[%s3826_s15 + $0x16] sm:$0x3]  ;;  %v3327_v22 = vld [vmem:[%s3826_s15 + $0x1a] sm:$0x3] }
  0x21   : > { %v3328_v23 = vld [vmem:[%s3826_s15 + $0x1e] sm:$0x3]  ;;  %409 = vst [vmem:[%s373_s16 + $0xa] sm:$0x3] %v3326_v21  ;;  %411 = vst [vmem:[%s373_s16 + $0xc] sm:$0x3] %v3327_v22 }
  0x22   : > { %413 = vst [vmem:[%s373_s16 + $0xe] sm:$0x3] %v3328_v23  ;;  %v3329_v24 = vld [vmem:[%s3826_s15 + $0x22] sm:$0x3]  ;;  %v3330_v25 = vld [vmem:[%s3826_s15 + $0x26] sm:$0x3] }
  0x23   : > { %v3331_v26 = vld [vmem:[%s3826_s15 + $0x2a] sm:$0x3]  ;;  %415 = vst [vmem:[%s373_s16 + $0x10] sm:$0x3] %v3329_v24  ;;  %417 = vst [vmem:[%s373_s16 + $0x12] sm:$0x3] %v3330_v25 }
  0x24   : > { %419 = vst [vmem:[%s373_s16 + $0x14] sm:$0x3] %v3331_v26  ;;  %v3332_v27 = vld [vmem:[%s3826_s15 + $0x2e] sm:$0x3]  ;;  %v3333_v28 = vld [vmem:[%s3826_s15 + $0x32] sm:$0x3] }
  0x25   : > { %v3334_v29 = vld [vmem:[%s3826_s15 + $0x36] sm:$0x3]  ;;  %421 = vst [vmem:[%s373_s16 + $0x16] sm:$0x3] %v3332_v27  ;;  %423 = vst [vmem:[%s373_s16 + $0x18] sm:$0x3] %v3333_v28 }
  0x26   : > { %425 = vst [vmem:[%s373_s16 + $0x1a] sm:$0x3] %v3334_v29  ;;  %v3335_v30 = vld [vmem:[%s3826_s15 + $0x3a] sm:$0x3]  ;;  %v3336_v31 = vld [vmem:[%s3826_s15 + $0x3e] sm:$0x3] }
  0x27   : > { %427 = vst [vmem:[%s373_s16 + $0x1c] sm:$0x3] %v3335_v30  ;;  %429 = vst [vmem:[%s373_s16 + $0x1e] sm:$0x3] %v3336_v31 }
  0x28 PF: > { %p3337_p6 = scmp.ge.s32.totalorder %s3710_s22, 1  ;;  %p510_p7 = scmp.lt.s32.totalorder %s3710_s22, 3 }
  0x2a   : > { %p511_p8 = pnand %p3337_p6, %p510_p7 }
  0x2c   : > { %514 = sbr.rel (%p511_p8) target bundleno = 1476 (0x5c4), region = 114 }
  0x31   : > { %s517_s17 = sand.u32 1, %s3694_s18   ;;  %vm645_vm0 = vcmask 64512   ;;  %v4709_v32 = vmov 0.0   ;;  %vm3713_vm1 = vmmov 0   ;;  %vm765_vm2 = vcmask 1041409   ;;  %p593_p9 = scmp.lt.s32.totalorder %s3702_s20, 1 }
  0x32   : > { %3540 = vmatprep.subr.bf16.mxu0 %v4709_v32  ;;  %s3848_s24 = sshll.u32 %s517_s17, 5  ;;  %646 = vst.msk [vmem:[#allocation4] sm:$0xff] %vm645_vm0, %v4709_v32  ;;  %647 = vst.msk [vmem:[#allocation4 + $0x8] sm:$0xff] %vm645_vm0, %v4709_v32  ;;  %3546 = vmatprep.subr.bf16.mxu1 %v4709_v32  ;;  %vm768_vm3 = vcmask 1042434   ;;  %vm771_vm4 = vcmask 1043459   ;;  %vm774_vm5 = vcmask 1044484  }
  0x33   : > { %648 = vst.msk [vmem:[#allocation4 + $0x10] sm:$0xff] %vm645_vm0, %v4709_v32  ;;  %649 = vst.msk [vmem:[#allocation4 + $0x18] sm:$0xff] %vm645_vm0, %v4709_v32  ;;  %s3860_s18 = scalar_lea.vmem [#allocation5], %s3848_s24  ;;  %3542 = vmatprep.mubr.msk.bf16.mxu0 %vm3713_vm1, %v4709_v32  ;;  %3548 = vmatprep.mubr.msk.bf16.mxu1 %vm3713_vm1, %v4709_v32  ;;  %s4784_s20 = smov (!%p593_p9, %s3702_s20), 1  ;;  %vm777_vm6 = vcmask 1045509   ;;  %vm780_vm7 = vcmask 1046534  }
  0x34   : > { %v3863_v33 = vld.sshfl [vmem:[%s3860_s18] sm:$0x1 pattern:$0x76325410]  ;;  %s3520_s25 = sshll.u32 %s4784_s20, 4  ;;  %vm783_vm8 = vcmask 1047559  }
  0x35   : > { %v3870_v34 = vld.sshfl [vmem:[%s3860_s18 + $0x2] sm:$0x1 pattern:$0x76325410]  ;;  %v4704_v36 = vunpack.c.l.b16 %v3863_v33  ;;  %s3966_s29 = scalar_lea.vmem %s4662_s0, %s3520_s25  ;;  %vm642_vm9 = vcmask 31744   ;;  %s3342_s30 = sshll.u32 %s4784_s20, 3 }
  0x36   : > { %v3873_v35 = vld.sshfl [vmem:[%s3860_s18 + $0x4] sm:$0x1 pattern:$0x76325410]  ;;  %v4696_v37 = vunpack.c.l.b16 %v3870_v34  ;;  %644 = vst.msk [vmem:[#allocation3] sm:$0xff] %vm642_vm9, %v4709_v32  ;;  %s616_s8 = scalar_lea.vmem %s4665_s3, %s3342_s30  ;;  %s626_s11 = scalar_lea.vmem %s4666_s4, %s3342_s30  ;;  %vm1009_vm10 = vcmask 130048  }
  0x37   : > { %v3878_v38 = vld.sshfl [vmem:[%s3860_s18 + $0x6] sm:$0x1 pattern:$0x76325410]  ;;  %v4699_v39 = vunpack.c.l.b16 %v3873_v35  ;;  %vm1257_vm11 = vcmask 7168   ;;  %s4073_s12 = scalar_lea.vmem [#allocation6], %s3848_s24 }
  0x38   : > { %v3883_v40 = vld.sshfl [vmem:[%s3860_s18 + $0x8] sm:$0x1 pattern:$0x76325410]  ;;  %v4692_v41 = vunpack.c.l.b16 %v3878_v38  ;;  %v930_v42 = vrot.slane %v4696_v37, 7  ;;  %vm1871_vm12 = vcmask 15368  }
  0x39   : > { %v3889_v43 = vld.sshfl [vmem:[%s3860_s18 + $0xa] sm:$0x1 pattern:$0x76325410]  ;;  %v4690_v44 = vunpack.c.l.b16 %v3883_v40  ;;  %v932_v45 = vrot.slane %v4699_v39, 6  ;;  %vm2491_vm13 = vcmask 23568  }
  0x3a   : > { %v3895_v46 = vld.sshfl [vmem:[%s3860_s18 + $0xc] sm:$0x1 pattern:$0x76325410]  ;;  %v4688_v47 = vunpack.c.l.b16 %v3889_v43  ;;  %v931_v48 = vsel %vm765_vm2, %v930_v42, %v4704_v36  ;;  %v934_v49 = vrot.slane %v4692_v41, 5  ;;  %vm3111_vm14 = vcmask 31768  }
  0x3b   : > { %v3904_v50 = vld.sshfl [vmem:[%s3860_s18 + $0xe] sm:$0x1 pattern:$0x76325410]  ;;  %v4681_v51 = vunpack.c.l.b16 %v3895_v46  ;;  %v933_v52 = vsel %vm768_vm3, %v932_v45, %v931_v48  ;;  %v936_v53 = vrot.slane %v4690_v44, 4  ;;  %s3344_s13 = sshll.u32 %s4784_s20, 2 }
  0x3c   : > { %v3916_v54 = vld.sshfl [vmem:[%s3860_s18 + $0x10] sm:$0x1 pattern:$0x76325410]  ;;  %v935_v55 = vsel %vm771_vm4, %v934_v49, %v933_v52  ;;  %v938_v56 = vrot.slane %v4688_v47, 3  ;;  %v4677_v58 = vunpack.c.l.b16 %v3904_v50  ;;  %s4638_s16 = scalar_lea.vmem %s4667_s5, %s3344_s13  ;;  %vm1272_vm15 = vcmask 60416  }
  0x3d   : > { %v3922_v57 = vld.sshfl [vmem:[%s3860_s18 + $0x12] sm:$0x1 pattern:$0x76325410]  ;;  %v937_v59 = vsel %vm774_vm5, %v936_v53, %v935_v55  ;;  %v4701_v61 = vunpack.c.l.b16 %v3916_v54  ;;  %v940_v63 = vrot.slane %v4681_v51, 2  ;;  %s3719_s20 = smov 8  }
  0x3e   : > { %v3927_v60 = vld.sshfl [vmem:[%s3860_s18 + $0x14] sm:$0x1 pattern:$0x76325410]  ;;  %v4694_v62 = vunpack.c.l.b16 %v3922_v57  ;;  %v939_v2 = vsel %vm777_vm6, %v938_v56, %v937_v59  ;;  %v942_v8 = vrot.slane %v4677_v58, 1  ;;  %s3720_s17 = smov 16  }
  0x3f   : > { %v3934_v0 = vld.sshfl [vmem:[%s3860_s18 + $0x16] sm:$0x1 pattern:$0x76325410]  ;;  %v4698_v1 = vunpack.c.l.b16 %v3927_v60  ;;  %v941_v12 = vsel %vm780_vm7, %v940_v63, %v939_v2  ;;  %s3721_s24 = smov 24  }
  0x40   : > { %v3940_v3 = vld.sshfl [vmem:[%s3860_s18 + $0x18] sm:$0x1 pattern:$0x76325410]  ;;  %v4691_v4 = vunpack.c.l.b16 %v3934_v0  ;;  %v944_v5 = vrot.slane %v4694_v62, 7  ;;  %v943_v23 = vsel %vm783_vm8, %v942_v8, %v941_v12 }
  0x41   : > { %v3946_v6 = vld.sshfl [vmem:[%s3860_s18 + $0x1a] sm:$0x1 pattern:$0x76325410]  ;;  %v4689_v7 = vunpack.c.l.b16 %v3940_v3  ;;  %v946_v9 = vrot.slane %v4698_v1, 6 }
  0x42   : > { %v3954_v10 = vld.sshfl [vmem:[%s3860_s18 + $0x1c] sm:$0x1 pattern:$0x76325410]  ;;  %v4686_v11 = vunpack.c.l.b16 %v3946_v6  ;;  %v945_v13 = vsel %vm765_vm2, %v944_v5, %v4701_v61  ;;  %v948_v14 = vrot.slane %v4691_v4, 5 }
  0x43   : > { %v3969_v15 = vld.sshfl [vmem:[%s3860_s18 + $0x1e] sm:$0x1 pattern:$0x76325410]  ;;  %v4680_v16 = vunpack.c.l.b16 %v3954_v10  ;;  %v947_v17 = vsel %vm768_vm3, %v946_v9, %v945_v13  ;;  %v950_v18 = vrot.slane %v4689_v7, 4 }
  0x44   : > { %v4674_v19 = vunpack.c.l.b16 %v3969_v15  ;;  %v949_v20 = vsel %vm771_vm4, %v948_v14, %v947_v17  ;;  %v952_v21 = vrot.slane %v4686_v11, 3  ;;  %v3980_v22 = vld.sshfl [vmem:[%s3966_s29] sm:$0x1 pattern:$0x76325410] }
  0x45   : > { %v951_v24 = vsel %vm774_vm5, %v950_v18, %v949_v20  ;;  %v954_v25 = vrot.slane %v4680_v16, 2  ;;  %v3987_v26 = vld.sshfl [vmem:[%s3966_s29 + $0x2] sm:$0x1 pattern:$0x76325410]  ;;  %v4684_v30 = vunpack.c.l.b16 %v3980_v22 }
  0x46   : > { %v953_v27 = vsel %vm777_vm6, %v952_v21, %v951_v24  ;;  %v956_v28 = vrot.slane %v4674_v19, 1  ;;  %v3993_v29 = vld.sshfl [vmem:[%s3966_s29 + $0x4] sm:$0x1 pattern:$0x76325410]  ;;  %v4676_v31 = vunpack.c.l.b16 %v3987_v26 }
  0x47   : > { %v955_v42 = vsel %vm780_vm7, %v954_v25, %v953_v27  ;;  %v3999_v45 = vld.sshfl [vmem:[%s3966_s29 + $0x6] sm:$0x1 pattern:$0x76325410]  ;;  %v4678_v48 = vunpack.c.l.b16 %v3993_v29 }
  0x48   : > { %v957_v49 = vsel %vm783_vm8, %v956_v28, %v955_v42  ;;  %v4004_v52 = vld.sshfl [vmem:[%s3966_s29 + $0x8] sm:$0x1 pattern:$0x76325410]  ;;  %v4673_v53 = vunpack.c.l.b16 %v3999_v45  ;;  %v764_v55 = vrot.slane %v4676_v31, 7 }
  0x49   : > { %v958_v56 = vpack.c.b16 %v957_v49, %v943_v23  ;;  %v4010_v59 = vld.sshfl [vmem:[%s3966_s29 + $0xa] sm:$0x1 pattern:$0x76325410]  ;;  %v4672_v63 = vunpack.c.l.b16 %v4004_v52  ;;  %v767_v2 = vrot.slane %v4678_v48, 6 }
  0x4a   : > { %v4016_v5 = vld.sshfl [vmem:[%s3966_s29 + $0xc] sm:$0x1 pattern:$0x76325410]  ;;  %v4671_v8 = vunpack.c.l.b16 %v4010_v59  ;;  %v766_v9 = vsel %vm765_vm2, %v764_v55, %v4684_v30  ;;  %v770_v12 = vrot.slane %v4673_v53, 5 }
  0x4b   : > { %v964_v13 = vsel %vm645_vm0, %v958_v56, 0  ;;  %v4026_v14 = vld.sshfl [vmem:[%s3966_s29 + $0xe] sm:$0x1 pattern:$0x76325410]  ;;  %v4670_v17 = vunpack.c.l.b16 %v4016_v5  ;;  %v769_v18 = vsel %vm768_vm3, %v767_v2, %v766_v9  ;;  %v773_v20 = vrot.slane %v4672_v63, 4 }
  0x4c   : > { %3541 = vmatpush3.bf16.xpose.msra.mxu0 %v964_v13  ;;  %v4669_v21 = vunpack.c.l.b16 %v4026_v14  ;;  %v772_v23 = vsel %vm771_vm4, %v770_v12, %v769_v18  ;;  %v776_v24 = vrot.slane %v4671_v8, 3  ;;  %v3714_v2 = vmov -1e+30   ;;  %v4056_v9 = vld [vmem:[%s616_s8] sm:$0xff] }
  0x4d   : > { %v775_v25 = vsel %vm774_vm5, %v773_v20, %v772_v23  ;;  %v779_v27 = vrot.slane %v4670_v17, 2  ;;  %3558 = vmatprep.subr.bf16.mxu0 %v4709_v32  ;;  %643 = vst.msk [vmem:[#allocation2] sm:$0xff] %vm642_vm9, %v3714_v2  ;;  %v4058_v13 = vld [vmem:[%s626_s11] sm:$0xff] }
  0x4e   : > { %v778_v28 = vsel %vm777_vm6, %v776_v24, %v775_v25  ;;  %v782_v42 = vrot.slane %v4669_v21, 1  ;;  %v4102_v21 = vld.sshfl [vmem:[%s4073_s12 + $0xa] sm:$0x1 pattern:$0x76325410] }
  0x4f   : > { %v781_v49 = vsel %vm780_vm7, %v779_v27, %v778_v28  ;;  %v4668_v28 = vmov 0   ;;  %v4108_v63 = vld.sshfl [vmem:[%s4073_s12 + $0xc] sm:$0x1 pattern:$0x76325410]  ;;  %v4687_v53 = vunpack.c.l.b16 %v4102_v21 }
  0x50   : > { %v784_v55 = vsel %vm783_vm8, %v782_v42, %v781_v49  ;;  %3638 = vset.pattern.permute.xlu0 %v4668_v28  ;;  %v4117_v31 = vld.sshfl [vmem:[%s4073_s12 + $0xe] sm:$0x1 pattern:$0x76325410]  ;;  %v4693_v58 = vunpack.c.l.b16 %v4108_v63 }
  0x51   : > { %v785_v56 = vpack.c.b16 %v784_v55, %v784_v55  ;;  %v4124_v16 = vld.sshfl [vmem:[%s4073_s12 + $0x10] sm:$0x1 pattern:$0x76325410] }
  0x52   : > { %v4134_v30 = vld.sshfl [vmem:[%s4073_s12 + $0x14] sm:$0x1 pattern:$0x76325410] }
  0x53   : > { %3543 = vmatmul.mubr.msk.bf16.vlgmr.msra.gmra.mxu0 %vm645_vm0, %v785_v56  ;;  %v4076_v56 = vld.sshfl [vmem:[%s4073_s12 + $0x2] sm:$0x1 pattern:$0x76325410] }
  0x54   : > { %3560 = vmatprep.mubr.msk.bf16.mxu0 %vm3713_vm1, %v4709_v32  ;;  %v4067_v42 = vld [vmem:[#allocation2] sm:$0xff]  ;;  %v4153_v7 = vld.sshfl [vmem:[%s4073_s12 + $0x1a] sm:$0x1 pattern:$0x76325410] }
  0x55   : > { %4718 = vst [vmem:[#allocation7_spill] sm:$0xff] %v4067_v42  ;;  %v4140_v11 = vld.sshfl [vmem:[%s4073_s12 + $0x16] sm:$0x1 pattern:$0x76325410] }
  0x56   : > { %v4159_v41 = vld.sshfl [vmem:[%s4073_s12 + $0x1c] sm:$0x1 pattern:$0x76325410] }
  0x57   : > { %v4705_v37 = vunpack.c.l.b16 %v4159_v41 }
 0x113   : > { %v1000_v12 = vpop.f32.mrf.mxu0 }
 0x114   : > { %v1006_v18 = vmul.f32 %v1000_v12, %v4056_v9  ;;  %v4084_v12 = vld.sshfl [vmem:[%s4073_s12] sm:$0x1 pattern:$0x76325410] }
 0x115   : > { %v3544_v20 = vpop.f32.mrf.mxu0 }
 0x116   : > { %v4062_v23 = vadd.f32 %v1006_v18, %v4058_v13  ;;  %v4675_v18 = vunpack.c.l.b16 %v4076_v56  ;;  %v4088_v20 = vld.sshfl [vmem:[%s4073_s12 + $0x4] sm:$0x1 pattern:$0x76325410] }
 0x117   : > { %v1003_v24 = vpop.f32.mrf.mxu0 }
 0x118   : > { %v1010_v25 = vsel %vm1009_vm10, %v4062_v23, -inf  ;;  %v4682_v24 = vunpack.c.l.b16 %v4084_v12  ;;  %v1176_v28 = vrot.slane %v4675_v18, 7 }
 0x119   : > { %1011 = vmax.xlane.f32.xlu0 %v1010_v25  ;;  %v3545_v27 = vpop.f32.mrf.mxu0  ;;  %v4092_v25 = vld.sshfl [vmem:[%s4073_s12 + $0x6] sm:$0x1 pattern:$0x76325410] }
 0x11a   : > { %v4679_v27 = vunpack.c.l.b16 %v4088_v20  ;;  %v4683_v2 = vunpack.c.l.b16 %v4092_v25  ;;  %v1177_v19 = vsel %vm765_vm2, %v1176_v28, %v4682_v24  ;;  %v1184_v28 = vrot.slane %v4687_v53, 3  ;;  %v4130_v24 = vld.sshfl [vmem:[%s4073_s12 + $0x12] sm:$0x1 pattern:$0x76325410] }
 0x11b   : > { %v4146_v53 = vld.sshfl [vmem:[%s4073_s12 + $0x18] sm:$0x1 pattern:$0x76325410] }
 0x11c   : > { %v1178_v8 = vrot.slane %v4679_v27, 6  ;;  %v1180_v18 = vrot.slane %v4683_v2, 5  ;;  %v4708_v44 = vunpack.c.l.b16 %v4146_v53 }
 0x11e   : > { %v1179_v48 = vsel %vm768_vm3, %v1178_v8, %v1177_v19  ;;  %v4700_v19 = vunpack.c.l.b16 %v4117_v31  ;;  %v4703_v8 = vunpack.c.l.b16 %v4124_v16  ;;  %v1196_v39 = vrot.slane %v4708_v44, 4 }
 0x11f   : > { %v1181_v51 = vsel %vm771_vm4, %v1180_v18, %v1179_v48  ;;  %v4697_v48 = vunpack.c.l.b16 %v4134_v30  ;;  %v1186_v18 = vrot.slane %v4693_v58, 2  ;;  %v4707_v58 = vunpack.c.l.b16 %v4153_v7 }
 0x120   : > { %v1188_v62 = vrot.slane %v4700_v19, 1 }
 0x121   : > { %v1192_v4 = vrot.slane %v4697_v48, 6 }
 0x1a2   : > { %v1012_v49 = vpop.xlane.xlu0 %1011 }
 0x1a3   : > { %v4070_v55 = vmax.f32 %v4067_v42, %v1012_v49  ;;  %v4096_v49 = vld.sshfl [vmem:[%s4073_s12 + $0x8] sm:$0x1 pattern:$0x76325410] }
 0x1a4   : > { %v4685_v17 = vunpack.c.l.b16 %v4096_v49  ;;  %v4361_v42 = vld.sshfl [vmem:[%s3966_s29 + $0xa] sm:$0x2 pattern:$0x76325410] }
 0x1a5   : > { %4719 = vst [vmem:[#allocation8_spill] sm:$0xff] %v4070_v55  ;;  %1258 = vst.msk [vmem:[#allocation2] sm:$0xff] %vm1257_vm11, %v4070_v55  ;;  %1019 = vperm.xlu0 %3638, %v4070_v55  }
 0x1a6   : > { %v1182_v27 = vrot.slane %v4685_v17, 4  ;;  %v4695_v17 = vunpack.c.l.b16 %v4130_v24 }
 0x1a8   : > { %v1183_v2 = vsel %vm774_vm5, %v1182_v27, %v1181_v51  ;;  %v4702_v51 = vunpack.c.l.b16 %v4140_v11  ;;  %v1190_v47 = vrot.slane %v4695_v17, 7  ;;  %v4170_v17 = vld.sshfl [vmem:[%s4073_s12 + $0x1e] sm:$0x1 pattern:$0x76325410] }
 0x1a9   : > { %v1185_v27 = vsel %vm777_vm6, %v1184_v28, %v1183_v2  ;;  %v4706_v19 = vunpack.c.l.b16 %v4170_v17 }
 0x1aa   : > { %v1191_v2 = vsel %vm765_vm2, %v1190_v47, %v4703_v8  ;;  %v1194_v28 = vrot.slane %v4702_v51, 5  ;;  %v1187_v48 = vsel %vm780_vm7, %v1186_v18, %v1185_v27  ;;  %v1198_v47 = vrot.slane %v4707_v58, 3 }
 0x1ab   : > { %v1193_v1 = vsel %vm768_vm3, %v1192_v4, %v1191_v2  ;;  %v1200_v8 = vrot.slane %v4705_v37, 2  ;;  %v1189_v36 = vsel %vm783_vm8, %v1188_v62, %v1187_v48  ;;  %v1202_v4 = vrot.slane %v4706_v19, 1 }
 0x1ac   : > { %v1195_v61 = vsel %vm771_vm4, %v1194_v28, %v1193_v1  ;;  %v4721_v28 = vunpack.c.l.b16 %v3916_v54  ;;  %v4722_v62 = vunpack.c.l.b16 %v3873_v35  ;;  %v4727_v35 = vunpack.c.l.b16 %v3934_v0 }
 0x1ad   : > { %v1197_v51 = vsel %vm774_vm5, %v1196_v39, %v1195_v61  ;;  %v4720_v39 = vunpack.c.l.b16 %v3863_v33  ;;  %v4731_v0 = vunpack.c.l.b16 %v3946_v6  ;;  %v4733_v6 = vunpack.c.l.b16 %v3895_v46 }
 0x1ae   : > { %v1199_v18 = vsel %vm777_vm6, %v1198_v47, %v1197_v51  ;;  %v1559_v37 = vrot.slane %v4721_v28, 1  ;;  %v1547_v48 = vrot.slane %v4722_v62, 7  ;;  %v4723_v51 = vunpack.c.l.b16 %v3927_v60 }
 0x1af   : > { %v1201_v27 = vsel %vm780_vm7, %v1200_v8, %v1199_v18  ;;  %v1545_v61 = vrot.slane %v4720_v39, 1  ;;  %v4724_v47 = vunpack.c.l.b16 %v3870_v34  ;;  %v4725_v18 = vunpack.c.l.b16 %v3922_v57 }
 0x1b0   : > { %v1203_v2 = vsel %vm783_vm8, %v1202_v4, %v1201_v27  ;;  %v1561_v8 = vrot.slane %v4723_v51, 7  ;;  %v4726_v4 = vunpack.c.l.b16 %v3878_v38  ;;  %v1563_v27 = vrot.slane %v4727_v35, 6 }
 0x1b1   : > { %v1204_v1 = vpack.c.b16 %v1203_v2, %v1189_v36  ;;  %v1546_v36 = vsel %vm765_vm2, %v4724_v47, %v1545_v61  ;;  %v1560_v33 = vsel %vm765_vm2, %v4725_v18, %v1559_v37  ;;  %v4728_v34 = vunpack.c.l.b16 %v3883_v40  ;;  %v4227_v40 = vld.sshfl [vmem:[%s3860_s18 + $0x2] sm:$0x2 pattern:$0x76325410] }
 0x1b2   : > { %v1549_v54 = vrot.slane %v4726_v4, 6  ;;  %v1548_v60 = vsel %vm768_vm3, %v1547_v48, %v1546_v36  ;;  %v1562_v2 = vsel %vm768_vm3, %v1561_v8, %v1560_v33  ;;  %v4729_v39 = vunpack.c.l.b16 %v3940_v3  ;;  %v4224_v8 = vld.sshfl [vmem:[%s3860_s18] sm:$0x2 pattern:$0x76325410] }
 0x1b3   : > { %3547 = vmatpush3.bf16.msra.mxu1 %v1204_v1  ;;  %v1551_v1 = vrot.slane %v4728_v34, 5  ;;  %v1564_v38 = vsel %vm771_vm4, %v1563_v27, %v1562_v2  ;;  %v4730_v61 = vunpack.c.l.b16 %v3889_v43  ;;  %v1567_v62 = vrot.slane %v4731_v0, 4  ;;  %v4232_v36 = vld.sshfl [vmem:[%s3860_s18 + $0x10] sm:$0x2 pattern:$0x76325410] }
 0x1b4   : > { %3552 = vmatprep.subr.bf16.mxu1 %v4709_v32  ;;  %v1565_v57 = vrot.slane %v4729_v39, 5  ;;  %v1550_v37 = vsel %vm771_vm4, %v1549_v54, %v1548_v60  ;;  %v4732_v48 = vunpack.c.l.b16 %v3980_v22  ;;  %v4235_v43 = vld.sshfl [vmem:[%s3860_s18 + $0x12] sm:$0x2 pattern:$0x76325410]  ;;  %v1555_v18 = vrot.slane %v4733_v6, 3 }
 0x1b5   : > { %v1553_v28 = vrot.slane %v4730_v61, 4  ;;  %v1552_v3 = vsel %vm774_vm5, %v1551_v1, %v1550_v37  ;;  %v4734_v33 = vunpack.c.l.b16 %v3954_v10  ;;  %v4735_v4 = vunpack.c.l.b16 %v3993_v29  ;;  %v4251_v10 = vld.sshfl [vmem:[%s3860_s18 + $0x6] sm:$0x2 pattern:$0x76325410] }
 0x1b6   : > { %v1386_v51 = vrot.slane %v4732_v48, 1  ;;  %v1566_v47 = vsel %vm774_vm5, %v1565_v57, %v1564_v38  ;;  %v4736_v27 = vunpack.c.l.b16 %v3904_v50  ;;  %v4737_v34 = vunpack.c.l.b16 %v3987_v26  ;;  %v4262_v61 = vld.sshfl [vmem:[%s3860_s18 + $0x8] sm:$0x2 pattern:$0x76325410] }
 0x1b7   : > { %v1569_v22 = vrot.slane %v4734_v33, 3  ;;  %v1388_v54 = vrot.slane %v4735_v4, 7  ;;  %v1554_v35 = vsel %vm777_vm6, %v1553_v28, %v1552_v3  ;;  %v1568_v2 = vsel %vm777_vm6, %v1567_v62, %v1566_v47  ;;  %v3440_v48 = vld.sshfl [vmem:[%s3860_s18 + $0x4] sm:$0x2 pattern:$0x76325410] }
 0x1b8   : > { %v1557_v60 = vrot.slane %v4736_v27, 2  ;;  %v1387_v46 = vsel %vm765_vm2, %v4737_v34, %v1386_v51  ;;  %v2149_v29 = vunpack.c.l.b16 %v4224_v8  ;;  %v2150_v1 = vunpack.c.l.b16 %v4227_v40  ;;  %v3448_v51 = vld.sshfl [vmem:[%s3860_s18 + $0x14] sm:$0x2 pattern:$0x76325410] }
 0x1b9   : > { %v2157_v39 = vunpack.c.l.b16 %v4232_v36  ;;  %v2158_v50 = vunpack.c.l.b16 %v4235_v43  ;;  %v4738_v57 = vunpack.c.l.b16 %v3969_v15  ;;  %v4739_v38 = vunpack.c.l.b16 %v3999_v45  ;;  %v4272_v3 = vld.sshfl [vmem:[%s3860_s18 + $0x16] sm:$0x2 pattern:$0x76325410] }
 0x1ba   : > { %v1556_v28 = vsel %vm780_vm7, %v1555_v18, %v1554_v35  ;;  %v1570_v0 = vsel %vm780_vm7, %v1569_v22, %v1568_v2  ;;  %v1389_v62 = vsel %vm768_vm3, %v1388_v54, %v1387_v46  ;;  %v4740_v8 = vunpack.c.l.b16 %v4004_v52  ;;  %v4275_v15 = vld.sshfl [vmem:[%s3860_s18 + $0xa] sm:$0x2 pattern:$0x76325410] }
 0x1bb   : > { %v1571_v37 = vrot.slane %v4738_v57, 2  ;;  %v1390_v26 = vrot.slane %v4739_v38, 6  ;;  %v2165_v45 = vrot.slane %v2149_v29, 2  ;;  %v2166_v47 = vrot.slane %v2150_v1, 1 }
 0x1bc   : > { %v1392_v40 = vrot.slane %v4740_v8, 5  ;;  %v2179_v36 = vrot.slane %v2157_v39, 2  ;;  %v2180_v43 = vrot.slane %v2158_v50, 1  ;;  %v1558_v6 = vsel %vm783_vm8, %v1557_v60, %v1556_v28 }
 0x1bd   : > { %v1572_v18 = vsel %vm783_vm8, %v1571_v37, %v1570_v0  ;;  %v1391_v33 = vsel %vm771_vm4, %v1390_v26, %v1389_v62  ;;  %v4281_v22 = vld.sshfl [vmem:[%s3860_s18 + $0x18] sm:$0x2 pattern:$0x76325410]  ;;  %v4712_v52 = vunpack.c.l.b16 %v4251_v10  ;;  %v4741_v54 = vunpack.c.l.b16 %v4010_v59 }
 0x1be   : > { %v4742_v27 = vunpack.c.l.b16 %v4016_v5  ;;  %v4713_v60 = vunpack.c.l.b16 %v4262_v61  ;;  %v4711_v34 = vunpack.c.l.b16 %v4272_v3  ;;  %v4293_v46 = vld.sshfl [vmem:[%s3966_s29] sm:$0x2 pattern:$0x76325410]  ;;  %v4743_v37 = vunpack.c.l.b16 %v4026_v14 }
 0x1bf   : > { %v1394_v35 = vrot.slane %v4741_v54, 4  ;;  %v2151_v26 = vunpack.c.l.b16 %v3440_v48  ;;  %v2159_v59 = vunpack.c.l.b16 %v3448_v51  ;;  %v4301_v28 = vld.sshfl [vmem:[%s3966_s29 + $0x2] sm:$0x2 pattern:$0x76325410]  ;;  %v1573_v5 = vpack.c.b16 %v1572_v18, %v1558_v6 }
 0x1c0   : > { %v4288_v2 = vrot.slane %v4742_v27, 3  ;;  %v4298_v38 = vrot.slane %v4743_v37, 2  ;;  %v1393_v0 = vsel %vm774_vm5, %v1392_v40, %v1391_v33  ;;  %v4305_v62 = vld.sshfl [vmem:[%s3860_s18 + $0xc] sm:$0x2 pattern:$0x76325410]  ;;  %v2181_v14 = vsel %vm765_vm2, %v2180_v43, %v2179_v36 }
 0x1c1   : > { %v4308_v8 = vld.sshfl [vmem:[%s3860_s18 + $0xe] sm:$0x2 pattern:$0x76325410]  ;;  %v4714_v48 = vunpack.c.l.b16 %v4275_v15  ;;  %v2161_v51 = vunpack.c.l.b16 %v4281_v22  ;;  %v2169_v6 = vrot.slane %v4712_v52, 7  ;;  %v2171_v18 = vrot.slane %v4713_v60, 6 }
 0x1c2   : > { %v4311_v54 = vld.sshfl [vmem:[%s3860_s18 + $0x1a] sm:$0x2 pattern:$0x76325410]  ;;  %v2183_v33 = vrot.slane %v4711_v34, 7  ;;  %v2182_v27 = vsel %vm768_vm3, %v2159_v59, %v2181_v14  ;;  %v2786_v37 = vrot.slane %v2150_v1, 2  ;;  %v4745_v55 = vunpack.c.l.b16 %v4308_v8 }
 0x1c3   : > { %v4320_v40 = vld.sshfl [vmem:[%s3860_s18 + $0x1c] sm:$0x2 pattern:$0x76325410]  ;;  %v2162_v43 = vunpack.c.l.b16 %v4311_v54  ;;  %v2799_v19 = vrot.slane %v2157_v39, 3  ;;  %v2800_v58 = vrot.slane %v2158_v50, 2 }
 0x1c4   : > { %v4329_v36 = vld.sshfl [vmem:[%s3860_s18 + $0x1e] sm:$0x2 pattern:$0x76325410]  ;;  %v2163_v39 = vunpack.c.l.b16 %v4320_v40  ;;  %v2788_v34 = vrot.slane %v2151_v26, 1  ;;  %v2802_v52 = vrot.slane %v2159_v59, 1  ;;  %v4744_v59 = vunpack.c.l.b16 %v4305_v62 }
 0x1c5   : > { %v4339_v32 = vld.sshfl [vmem:[%s3966_s29 + $0x6] sm:$0x2 pattern:$0x76325410]  ;;  %v2187_v60 = vrot.slane %v2162_v43, 5 }
 0x1c6   : > { %v3432_v14 = vld.sshfl [vmem:[%s3966_s29 + $0x4] sm:$0x2 pattern:$0x76325410]  ;;  %v2175_v50 = vrot.slane %v4744_v59, 4 }
 0x220   : > { %v1020_v4 = vpop.permute.xlu0 %1019 }
 0x221   : > { %v1022_v57 = vsub.f32 %v4062_v23, %v1020_v4  ;;  %v2167_v23 = vsel %vm765_vm2, %v2166_v47, %v2165_v45  ;;  %v1998_v45 = vunpack.c.l.b16 %v4293_v46  ;;  %v1999_v47 = vunpack.c.l.b16 %v4301_v28  ;;  %v4347_v46 = vld.sshfl [vmem:[%s3966_s29 + $0x8] sm:$0x2 pattern:$0x76325410] }
 0x222   : > { %v2168_v22 = vsel %vm768_vm3, %v2151_v26, %v2167_v23  ;;  %v2173_v28 = vrot.slane %v4714_v48, 5  ;;  %v2184_v23 = vsel %vm771_vm4, %v2183_v33, %v2182_v27  ;;  %v1578_v33 = vsel %vm645_vm0, %v1573_v5, 0 }
 0x223   : > { %v1023_v4 = vmul.f32 1.442695, %v1022_v57  ;;  %v2785_v57 = vrot.slane %v2149_v29, 3  ;;  %v2170_v54 = vsel %vm771_vm4, %v2169_v6, %v2168_v22  ;;  %v2006_v29 = vrot.slane %v1998_v45, 2 }
 0x224   : > { %v2007_v1 = vrot.slane %v1999_v47, 1  ;;  %v2801_v6 = vsel %vm765_vm2, %v2800_v58, %v2799_v19  ;;  %v2172_v22 = vsel %vm774_vm5, %v2171_v18, %v2170_v54  ;;  %v2000_v27 = vunpack.c.l.b16 %v3432_v14 }
 0x225   : > { %3648 = vpow2.f32 %v1023_v4  ;;  %v2185_v4 = vrot.slane %v2161_v51, 6  ;;  %v2787_v44 = vsel %vm765_vm2, %v2786_v37, %v2785_v57  ;;  %v1395_v26 = vsel %vm777_vm6, %v1394_v35, %v1393_v0 }
 0x226   : > { %v2177_v48 = vrot.slane %v4745_v55, 3  ;;  %v2008_v58 = vsel %vm765_vm2, %v2007_v1, %v2006_v29  ;;  %v2189_v19 = vrot.slane %v2163_v39, 4  ;;  %v2002_v5 = vunpack.c.l.b16 %v4347_v46 }
 0x227   : > { %v2186_v40 = vsel %vm774_vm5, %v2185_v4, %v2184_v23  ;;  %v2789_v18 = vsel %vm768_vm3, %v2788_v34, %v2787_v44  ;;  %v2803_v57 = vsel %vm768_vm3, %v2802_v52, %v2801_v6  ;;  %v2174_v37 = vsel %vm777_vm6, %v2173_v28, %v2172_v22  ;;  %v3436_v23 = vld.sshfl [vmem:[%s3966_s29 + $0xc] sm:$0x2 pattern:$0x76325410] }
 0x228   : > { %v2188_v35 = vsel %vm777_vm6, %v2187_v60, %v2186_v40  ;;  %v4746_v0 = vunpack.c.l.b16 %v4329_v36  ;;  %v4747_v55 = vunpack.c.l.b16 %v4339_v32  ;;  %v2003_v14 = vunpack.c.l.b16 %v4361_v42 }
 0x229   : > { %v2009_v29 = vsel %vm768_vm3, %v2000_v27, %v2008_v58  ;;  %v4748_v46 = vunpack.c.l.b16 %v4262_v61  ;;  %v2805_v52 = vrot.slane %v2161_v51, 7  ;;  %v4749_v34 = vunpack.c.l.b16 %v4251_v10 }
 0x22a   : > { %v2191_v4 = vrot.slane %v4746_v0, 3  ;;  %v2010_v54 = vrot.slane %v4747_v55, 7  ;;  %v4750_v28 = vunpack.c.l.b16 %v4272_v3  ;;  %v2626_v6 = vrot.slane %v1998_v45, 3 }
 0x22b   : > { %v2791_v44 = vrot.slane %v4748_v46, 7  ;;  %v2790_v60 = vsel %vm771_vm4, %v4749_v34, %v2789_v18  ;;  %v2627_v22 = vrot.slane %v1999_v47, 2  ;;  %v1397_v42 = vsel %vm780_vm7, %v4288_v2, %v1395_v26  ;;  %v3437_v47 = vld.sshfl [vmem:[%s3966_s29 + $0xe] sm:$0x2 pattern:$0x76325410] }
 0x22c   : > { %v2804_v1 = vsel %vm771_vm4, %v4750_v28, %v2803_v57  ;;  %v2176_v40 = vsel %vm780_vm7, %v2175_v50, %v2174_v37  ;;  %v2190_v61 = vsel %vm780_vm7, %v2189_v19, %v2188_v35  ;;  %v2012_v59 = vrot.slane %v2002_v5, 6 }
 0x22d   : > { %v2004_v51 = vunpack.c.l.b16 %v3436_v23  ;;  %v2011_v10 = vsel %vm771_vm4, %v2010_v54, %v2009_v29  ;;  %v4751_v18 = vunpack.c.l.b16 %v4275_v15  ;;  %v2807_v0 = vrot.slane %v2162_v43, 6 }
 0x22e   : > { %v2792_v2 = vsel %vm774_vm5, %v2791_v44, %v2790_v60  ;;  %v2806_v50 = vsel %vm774_vm5, %v2805_v52, %v2804_v1  ;;  %v2629_v26 = vrot.slane %v2000_v27, 1  ;;  %v2178_v19 = vsel %vm783_vm8, %v2177_v48, %v2176_v40 }
 0x22f   : > { %v2793_v3 = vrot.slane %v4751_v18, 6  ;;  %v2192_v57 = vsel %vm783_vm8, %v2191_v4, %v2190_v61  ;;  %v2014_v37 = vrot.slane %v2003_v14, 5  ;;  %v2628_v35 = vsel %vm765_vm2, %v2627_v22, %v2626_v6 }
 0x230   : > { %v2013_v15 = vsel %vm774_vm5, %v2012_v59, %v2011_v10  ;;  %v4752_v43 = vunpack.c.l.b16 %v4305_v62  ;;  %v2809_v54 = vrot.slane %v2163_v39, 5  ;;  %v4753_v23 = vmov 0.0  }
 0x231   : > { %v1399_v48 = vsel %vm783_vm8, %v4298_v38, %v1397_v42  ;;  %v2005_v27 = vunpack.c.l.b16 %v3437_v47  ;;  %v2794_v4 = vsel %vm777_vm6, %v2793_v3, %v2792_v2  ;;  %v2808_v29 = vsel %vm777_vm6, %v2807_v0, %v2806_v50 }
 0x232   : > { %v4388_v58 = vpop.eup %3648  ;;  %v2795_v55 = vrot.slane %v4752_v43, 5  ;;  %v2193_v46 = vpack.c.b16 %v2192_v57, %v2178_v19  ;;  %v2016_v44 = vrot.slane %v2004_v51, 4  ;;  %v2630_v62 = vsel %vm768_vm3, %v2629_v26, %v2628_v35 }
 0x233   : > { %v1031_v45 = vpack.c.bf16 %v4388_v58, %v4388_v58  ;;  %v2015_v39 = vsel %vm777_vm6, %v2014_v37, %v2013_v15  ;;  %v4755_v34 = vunpack.c.l.b16 %v4329_v36  ;;  %v1400_v38 = vpack.c.b16 %v1399_v48, %v1399_v48 }
 0x234   : > { %v2796_v28 = vsel %vm780_vm7, %v2795_v55, %v2794_v4  ;;  %v2810_v1 = vsel %vm780_vm7, %v2809_v54, %v2808_v29  ;;  %v2632_v6 = vrot.slane %v2002_v5, 7  ;;  %v2018_v22 = vrot.slane %v2005_v27, 3 }
 0x235   : > { %3549 = vmatmul.mubr.msk.bf16.vlgmr.msra.gmra.mxu1 %vm1009_vm10, %v1031_v45  ;;  %v2811_v60 = vrot.slane %v4755_v34, 4  ;;  %v4756_v42 = vunpack.c.l.b16 %v4339_v32  ;;  %v2198_v61 = vsel %vm645_vm0, %v2193_v46, 0  ;;  %v2017_v59 = vsel %vm780_vm7, %v2016_v44, %v2015_v39 }
 0x236   : > { %3553 = vmatpush3.bf16.xpose.msra.mxu1 %v1578_v33  ;;  %3554 = vmatprep.mubr.msk.bf16.mxu1 %vm3713_vm1, %v4753_v23  ;;  %v4754_v33 = vunpack.c.l.b16 %v4308_v8  ;;  %v2634_v10 = vrot.slane %v2003_v14, 6  ;;  %v2019_v32 = vsel %vm783_vm8, %v2018_v22, %v2017_v59  ;;  %v2636_v3 = vrot.slane %v2004_v51, 5 }
 0x237   : > { %3564 = vmatprep.subr.bf16.mxu1 %v4753_v23  ;;  %v2631_v40 = vsel %vm771_vm4, %v4756_v42, %v2630_v62  ;;  %v2812_v36 = vsel %vm783_vm8, %v2811_v60, %v2810_v1  ;;  %v2020_v45 = vpack.c.b16 %v2019_v32, %v2019_v32  ;;  %v2638_v47 = vrot.slane %v2005_v27, 4 }
 0x238   : > { %v2797_v52 = vrot.slane %v4754_v33, 4  ;;  %v2633_v18 = vsel %vm774_vm5, %v2632_v6, %v2631_v40  ;;  %v3716_v60 = vmov 1   ;;  %v4462_v40 = vld [vmem:[#allocation2] sm:$0xff]  ;;  %v4760_v32 = vunpack.c.l.b16 %v4134_v30 }
 0x239   : > { %v2635_v0 = vsel %vm777_vm6, %v2634_v10, %v2633_v18  ;;  %3639 = vset.pattern.permute.xlu1 %v3716_v60  ;;  %v4759_v10 = vunpack.c.l.b16 %v4088_v20  ;;  %v4764_v30 = vunpack.c.l.b16 %v4096_v49 }
 0x23a   : > { %v2798_v8 = vsel %vm783_vm8, %v2797_v52, %v2796_v28  ;;  %v2637_v2 = vsel %vm780_vm7, %v2636_v3, %v2635_v0  ;;  %v3717_v3 = vmov 2   ;;  %v4761_v0 = vunpack.c.l.b16 %v4076_v56 }
 0x23b   : > { %v2813_v5 = vpack.c.b16 %v2812_v36, %v2798_v8  ;;  %v2639_v50 = vsel %vm783_vm8, %v2638_v47, %v2637_v2  ;;  %v4758_v8 = vunpack.c.l.b16 %v4124_v16  ;;  %v1791_v18 = vrot.slane %v4759_v10, 7  ;;  %v3456_v10 = vld.sshfl [vmem:[%s4073_s12 + $0x2] sm:$0x2 pattern:$0x76325410] }
 0x23c   : > { %v2640_v26 = vpack.c.b16 %v2639_v50, %v2639_v50  ;;  %v4763_v16 = vunpack.c.l.b16 %v4130_v24  ;;  %v1795_v50 = vrot.slane %v4764_v30, 5  ;;  %v4767_v24 = vunpack.c.l.b16 %v4146_v53 }
 0x23d   : > { %3555 = vmatmul.mubr.msk.bf16.vlgmr.msra.gmra.mxu1 %vm645_vm0, %v1400_v38  ;;  %v2818_v14 = vsel %vm645_vm0, %v2813_v5, 0  ;;  %v1803_v36 = vrot.slane %v4758_v8, 1  ;;  %v1805_v5 = vrot.slane %v4760_v32, 7  ;;  %v1027_v8 = vsel %vm1009_vm10, %v4388_v58, 0.0 }
 0x23e   : > { %3565 = vmatpush3.bf16.xpose.msra.mxu1 %v2198_v61  ;;  %3566 = vmatprep.mubr.msk.bf16.mxu1 %vm3713_vm1, %v4753_v23  ;;  %v3464_v32 = vld.sshfl [vmem:[%s4073_s12 + $0x12] sm:$0x2 pattern:$0x76325410] }
 0x23f   : > { %3576 = vmatprep.subr.bf16.mxu1 %v4753_v23 }
 0x245   : > { %3567 = vmatmul.mubr.msk.bf16.vlgmr.msra.gmra.mxu1 %vm645_vm0, %v2020_v45 }
 0x246   : > { %3577 = vmatpush3.bf16.xpose.msra.mxu1 %v2818_v14  ;;  %3578 = vmatprep.mubr.msk.bf16.mxu1 %vm3713_vm1, %v4753_v23  ;;  %v1804_v14 = vsel %vm765_vm2, %v4763_v16, %v1803_v36  ;;  %v3455_v36 = vld.sshfl [vmem:[%s4073_s12] sm:$0x2 pattern:$0x76325410] }
 0x247   : > { %v3457_v16 = vld.sshfl [vmem:[%s4073_s12 + $0x4] sm:$0x2 pattern:$0x76325410] }
 0x24d   : > { %3579 = vmatmul.mubr.msk.bf16.vlgmr.msra.gmra.mxu1 %vm645_vm0, %v2640_v26  ;;  %v1806_v26 = vsel %vm768_vm3, %v1805_v5, %v1804_v14  ;;  %v2393_v5 = vunpack.c.l.b16 %v3455_v36  ;;  %v4553_v14 = vld.sshfl [vmem:[%s4073_s12 + $0x16] sm:$0x2 pattern:$0x76325410] }
 0x2f5   : > { %v4441_v51 = vpop.f32.mrf.mxu1 }
 0x2f7   : > { %v3550_v19 = vpop.f32.mrf.mxu1 }
 0x2f8   : > { %v4765_v19 = vunpack.c.l.b16 %v4140_v11 }
 0x2f9   : > { %v1246_v57 = vpop.f32.mrf.mxu1 }
 0x2fa   : > { %v1807_v56 = vrot.slane %v4765_v19, 6 }
 0x2fb   : > { %v3551_v37 = vpop.f32.mrf.mxu1 }
 0x2fc   : > { %v1808_v11 = vsel %vm771_vm4, %v1807_v56, %v1806_v26  ;;  %v3459_v26 = vld.sshfl [vmem:[%s4073_s12 + $0x8] sm:$0x2 pattern:$0x76325410]  ;;  %v2404_v56 = vunpack.c.l.b16 %v4553_v14 }
 0x2fd   : > { %v1614_v35 = vpop.f32.mrf.mxu1 }
 0x2fe   : > { %v1620_v15 = vmul.f32 %v1614_v35, %v4056_v9  ;;  %v1809_v35 = vrot.slane %v4767_v24, 5  ;;  %v3460_v24 = vld.sshfl [vmem:[%s4073_s12 + $0xa] sm:$0x2 pattern:$0x76325410] }
 0x2ff   : > { %v3556_v43 = vpop.f32.mrf.mxu1 }
 0x300   : > { %v4445_v55 = vadd.f32 %v1620_v15, %v4058_v13  ;;  %v4768_v15 = vunpack.c.l.b16 %v4153_v7  ;;  %v4771_v7 = vunpack.c.l.b16 %v4117_v31 }
 0x301   : > { %v1617_v54 = vpop.f32.mrf.mxu1 }
 0x302   : > { %v1623_v48 = vsel %vm1009_vm10, %v4445_v55, -inf  ;;  %v1811_v43 = vrot.slane %v4768_v15, 4 }
 0x303   : > { %1624 = vmax.xlane.f32.xlu1 %v1623_v48  ;;  %v3557_v27 = vpop.f32.mrf.mxu1  ;;  %v4769_v48 = vunpack.c.l.b16 %v4108_v63 }
 0x305   : > { %v2234_v4 = vpop.f32.mrf.mxu1  ;;  %v1799_v27 = vrot.slane %v4769_v48, 3  ;;  %v3468_v48 = vld.sshfl [vmem:[%s4073_s12 + $0x1a] sm:$0x2 pattern:$0x76325410] }
 0x306   : > { %v2240_v29 = vmul.f32 %v2234_v4, %v4056_v9  ;;  %v4770_v4 = vunpack.c.l.b16 %v4159_v41 }
 0x307   : > { %v3568_v46 = vpop.f32.mrf.mxu1 }
 0x308   : > { %v4451_v44 = vadd.f32 %v2240_v29, %v4058_v13  ;;  %v1813_v29 = vrot.slane %v4770_v4, 3  ;;  %v1801_v46 = vrot.slane %v4771_v7, 2  ;;  %v2427_v4 = vrot.slane %v2404_v56, 7 }
 0x309   : > { %v2237_v62 = vpop.f32.mrf.mxu1 }
 0x30a   : > { %v2243_v39 = vsel %vm1009_vm10, %v4451_v44, -inf  ;;  %v1810_v62 = vsel %vm774_vm5, %v1809_v35, %v1808_v11 }
 0x30b   : > { %v3569_v33 = vpop.f32.mrf.mxu1  ;;  %2244 = vmax.xlane.f32.xlu1 %v2243_v39  ;;  %v1812_v63 = vsel %vm777_vm6, %v1811_v43, %v1810_v62  ;;  %v4564_v43 = vld.sshfl [vmem:[%s4073_s12 + $0xc] sm:$0x2 pattern:$0x76325410] }
 0x30c   : > { %v4772_v33 = vunpack.c.l.b16 %v4170_v17 }
 0x30d   : > { %v2854_v52 = vpop.f32.mrf.mxu1 }
 0x30e   : > { %v2860_v34 = vmul.f32 %v2854_v52, %v4056_v9  ;;  %v1815_v52 = vrot.slane %v4772_v33, 2  ;;  %v2406_v33 = vunpack.c.l.b16 %v3468_v48 }
 0x30f   : > { %v3580_v38 = vpop.f32.mrf.mxu1 }
 0x310   : > { %v4458_v28 = vadd.f32 %v2860_v34, %v4058_v13  ;;  %v4757_v13 = vunpack.c.l.b16 %v4084_v12  ;;  %v4762_v12 = vunpack.c.l.b16 %v4092_v25  ;;  %v4766_v25 = vunpack.c.l.b16 %v4102_v21 }
 0x311   : > { %v2857_v1 = vpop.f32.mrf.mxu1  ;;  %v1814_v34 = vsel %vm780_vm7, %v1813_v29, %v1812_v63  ;;  %v2399_v63 = vunpack.c.l.b16 %v4564_v43 }
 0x312   : > { %v2863_v6 = vsel %vm1009_vm10, %v4458_v28, -inf  ;;  %v1789_v59 = vrot.slane %v4757_v13, 1  ;;  %v1793_v47 = vrot.slane %v4762_v12, 6  ;;  %v1797_v37 = vrot.slane %v4766_v25, 4 }
 0x313   : > { %v3581_v22 = vpop.f32.mrf.mxu1  ;;  %2864 = vmax.xlane.f32.xlu1 %v2863_v6  ;;  %v1816_v38 = vsel %vm783_vm8, %v1815_v52, %v1814_v34  ;;  %v3718_v6 = vmov 3   ;;  %v2402_v12 = vunpack.c.l.b16 %v3464_v32  ;;  %v2395_v25 = vunpack.c.l.b16 %v3457_v16 }
 0x314   : > { %v1790_v45 = vsel %vm765_vm2, %v4761_v0, %v1789_v59  ;;  %v4773_v59 = vmov 0   ;;  %v2394_v0 = vunpack.c.l.b16 %v3456_v10  ;;  %v2431_v16 = vrot.slane %v2406_v33, 5 }
 0x315   : > { %v1792_v2 = vsel %vm768_vm3, %v1791_v18, %v1790_v45  ;;  %v3463_v18 = vld.sshfl [vmem:[%s4073_s12 + $0x10] sm:$0x2 pattern:$0x76325410]  ;;  %v3044_v10 = vrot.slane %v2402_v12, 2 }
 0x316   : > { %v1794_v57 = vsel %vm771_vm4, %v1793_v47, %v1792_v2  ;;  %v2401_v45 = vunpack.c.l.b16 %v3463_v18  ;;  %v4549_v47 = vld.sshfl [vmem:[%s4073_s12 + $0x6] sm:$0x2 pattern:$0x76325410]  ;;  %v2410_v58 = vrot.slane %v2394_v0, 1 }
 0x317   : > { %v1796_v49 = vsel %vm774_vm5, %v1795_v50, %v1794_v57  ;;  %v3465_v2 = vld.sshfl [vmem:[%s4073_s12 + $0x14] sm:$0x2 pattern:$0x76325410]  ;;  %v2424_v50 = vrot.slane %v2402_v12, 1  ;;  %v2396_v19 = vunpack.c.l.b16 %v4549_v47 }
 0x318   : > { %v1798_v53 = vsel %vm777_vm6, %v1797_v37, %v1796_v49  ;;  %v2423_v30 = vrot.slane %v2401_v45, 2  ;;  %v3467_v57 = vld.sshfl [vmem:[%s4073_s12 + $0x18] sm:$0x2 pattern:$0x76325410]  ;;  %v2403_v37 = vunpack.c.l.b16 %v3465_v2  ;;  %v2397_v49 = vunpack.c.l.b16 %v3459_v26 }
 0x319   : > { %v1800_v39 = vsel %vm780_vm7, %v1799_v27, %v1798_v53  ;;  %v2405_v27 = vunpack.c.l.b16 %v3467_v57  ;;  %v2413_v11 = vrot.slane %v2396_v19, 7  ;;  %v3043_v36 = vrot.slane %v2401_v45, 3  ;;  %v3470_v18 = vld.sshfl [vmem:[%s4073_s12 + $0x1e] sm:$0x2 pattern:$0x76325410] }
 0x31a   : > { %v1802_v31 = vsel %vm783_vm8, %v1801_v46, %v1800_v39  ;;  %v2425_v15 = vsel %vm765_vm2, %v2424_v50, %v2423_v30  ;;  %v2398_v46 = vunpack.c.l.b16 %v3460_v24  ;;  %v3469_v39 = vld.sshfl [vmem:[%s4073_s12 + $0x1c] sm:$0x2 pattern:$0x76325410]  ;;  %v2415_v52 = vrot.slane %v2397_v49, 6 }
 0x31b   : > { %v1817_v1 = vpack.c.b16 %v1816_v38, %v1802_v31  ;;  %v2426_v53 = vsel %vm768_vm3, %v2403_v37, %v2425_v15  ;;  %v3462_v31 = vld.sshfl [vmem:[%s4073_s12 + $0xe] sm:$0x2 pattern:$0x76325410]  ;;  %v2407_v32 = vunpack.c.l.b16 %v3469_v39  ;;  %v3046_v2 = vrot.slane %v2403_v37, 1 }
 0x31c   : > { %v2428_v38 = vsel %vm771_vm4, %v2427_v4, %v2426_v53  ;;  %v2417_v47 = vrot.slane %v2398_v46, 5  ;;  %v2400_v14 = vunpack.c.l.b16 %v3462_v31  ;;  %v2408_v30 = vunpack.c.l.b16 %v3470_v18 }
 0x31d   : > { %3559 = vmatpush3.bf16.msra.mxu0 %v1817_v1  ;;  %v2429_v1 = vrot.slane %v2405_v27, 6  ;;  %v2419_v50 = vrot.slane %v2399_v63, 4  ;;  %v2433_v12 = vrot.slane %v2407_v32, 4  ;;  %v3049_v4 = vrot.slane %v2405_v27, 7 }
 0x31e   : > { %3570 = vmatprep.subr.bf16.mxu0 %v4753_v23  ;;  %v2421_v24 = vrot.slane %v2400_v14, 3  ;;  %v2435_v43 = vrot.slane %v2408_v30, 3  ;;  %v3051_v31 = vrot.slane %v2406_v33, 6  ;;  %v3053_v27 = vrot.slane %v2407_v32, 5 }
 0x31f   : > { %v3041_v33 = vrot.slane %v2400_v14, 4  ;;  %v4775_v14 = vld [vmem:[#allocation8_spill] sm:$0xff] }
 0x38c   : > { %v1625_v42 = vpop.xlane.xlu1 %1624 }
 0x38d   : > { %v4465_v61 = vmax.f32 %v4462_v40, %v1625_v42 }
 0x38f   : > { %v1627_v9 = vsub.f32 %v4462_v40, %v4465_v61  ;;  %1872 = vst.msk [vmem:[#allocation2] sm:$0xff] %vm1871_vm12, %v4465_v61  ;;  %1632 = vperm.xlu1 %3639, %v4465_v61  }
 0x393   : > { %3640 = vset.pattern.permute.xlu1 %v3717_v3 }
 0x394   : > { %v2245_v20 = vpop.xlane.xlu1 %2244 }
 0x396   : > { %v4502_v54 = vld [vmem:[#allocation2] sm:$0xff] }
 0x397   : > { %v4511_v21 = vmax.f32 %v4502_v54, %v2245_v20  ;;  %v2409_v20 = vrot.slane %v2393_v5, 2 }
 0x399   : > { %v2247_v41 = vsub.f32 %v4502_v54, %v4511_v21  ;;  %2492 = vst.msk [vmem:[#allocation2] sm:$0xff] %vm2491_vm13, %v4511_v21  ;;  %2252 = vperm.xlu1 %3640, %v4511_v21   ;;  %v2411_v35 = vsel %vm765_vm2, %v2410_v58, %v2409_v20  ;;  %v2430_v20 = vsel %vm774_vm5, %v2429_v1, %v2428_v38  ;;  %v3032_v58 = vrot.slane %v2395_v25, 1 }
 0x39a   : > { %v2412_v29 = vsel %vm768_vm3, %v2395_v25, %v2411_v35  ;;  %v2432_v26 = vsel %vm777_vm6, %v2431_v16, %v2430_v20  ;;  %v4774_v16 = vld [vmem:[#allocation7_spill] sm:$0xff] }
 0x39b   : > { %v2414_v34 = vsel %vm771_vm4, %v2413_v11, %v2412_v29  ;;  %v2434_v48 = vsel %vm780_vm7, %v2433_v12, %v2432_v26  ;;  %v3035_v11 = vrot.slane %v2397_v49, 7  ;;  %v3039_v49 = vrot.slane %v2399_v63, 5 }
 0x39c   : > { %v2865_v17 = vpop.xlane.xlu1 %2864  ;;  %v2436_v39 = vsel %vm783_vm8, %v2435_v43, %v2434_v48  ;;  %v4776_v20 = vsub.f32 %v4774_v16, %v4775_v14  ;;  %v2248_v40 = vmul.f32 1.442695, %v2247_v41 }
 0x39d   : > { %3641 = vset.pattern.permute.xlu1 %v3718_v6 }
 0x3a0   : > { %v4531_v22 = vld [vmem:[#allocation2] sm:$0xff] }
 0x3a1   : > { %v4534_v42 = vmax.f32 %v4531_v22, %v2865_v17  ;;  %v3029_v17 = vrot.slane %v2393_v5, 3 }
 0x3a3   : > { %v2867_v13 = vsub.f32 %v4531_v22, %v4534_v42  ;;  %3112 = vst.msk [vmem:[#allocation2] sm:$0xff] %vm3111_vm14, %v4534_v42  ;;  %2872 = vperm.xlu1 %3641, %v4534_v42  }
 0x3a5   : > { %v2868_v61 = vmul.f32 1.442695, %v2867_v13  ;;  %v1249_v13 = vld [vmem:[#allocation4] sm:$0xff] }
 0x3a7   : > { %3642 = vset.pattern.permute.xlu1 %v4773_v59 }
 0x3c7   : > { %1028 = vadd.xlane.f32.xlu1 %v1027_v8  ;;  %v3030_v8 = vrot.slane %v2394_v0, 2  ;;  %v3045_v0 = vsel %vm765_vm2, %v3044_v10, %v3043_v36  ;;  %v3055_v36 = vrot.slane %v2408_v30, 4 }
 0x3c8   : > { %v3047_v15 = vsel %vm768_vm3, %v3046_v2, %v3045_v0 }
 0x3c9   : > { %v3031_v5 = vsel %vm765_vm2, %v3030_v8, %v3029_v17  ;;  %vm3132_vm2 = vcmask 257216  }
 0x3ca   : > { %v3033_v35 = vsel %vm768_vm3, %v3032_v58, %v3031_v5  ;;  %v1015_v58 = vmul.f32 1.442695, %v4776_v20 }
 0x3cb   : > { %v3034_v53 = vsel %vm771_vm4, %v2396_v19, %v3033_v35 }
 0x40a   : > { %v1633_v7 = vpop.permute.xlu1 %1632 }
 0x40b   : > { %v1635_v62 = vsub.f32 %v4445_v55, %v1633_v7  ;;  %v2416_v55 = vsel %vm774_vm5, %v2415_v52, %v2414_v34  ;;  %v3048_v7 = vsel %vm771_vm4, %v2404_v56, %v3047_v15  ;;  %v3037_v52 = vrot.slane %v2398_v46, 6 }
 0x40c   : > { %v2418_v45 = vsel %vm777_vm6, %v2417_v47, %v2416_v55  ;;  %v3050_v34 = vsel %vm774_vm5, %v3049_v4, %v3048_v7 }
 0x40d   : > { %v1636_v59 = vmul.f32 1.442695, %v1635_v62  ;;  %v2420_v37 = vsel %vm780_vm7, %v2419_v50, %v2418_v45  ;;  %v1628_v50 = vmul.f32 1.442695, %v1627_v9 }
 0x40e   : > { %v2422_v62 = vsel %vm783_vm8, %v2421_v24, %v2420_v37 }
 0x40f   : > { %3650 = vpow2.f32 %v1636_v59  ;;  %v2437_v1 = vpack.c.b16 %v2436_v39, %v2422_v62  ;;  %v3052_v59 = vsel %vm777_vm6, %v3051_v31, %v3050_v34 }
 0x410   : > { %v3054_v10 = vsel %vm780_vm7, %v3053_v27, %v3052_v59 }
 0x414   : > { %v2253_v57 = vpop.permute.xlu1 %2252 }
 0x415   : > { %v2255_v25 = vsub.f32 %v4451_v44, %v2253_v57  ;;  %v3036_v44 = vsel %vm774_vm5, %v3035_v11, %v3034_v53 }
 0x416   : > { %v3038_v56 = vsel %vm777_vm6, %v3037_v52, %v3036_v44  ;;  %v1863_v44 = vld [vmem:[#allocation4 + $0x8] sm:$0xff] }
 0x417   : > { %v2256_v29 = vmul.f32 1.442695, %v2255_v25  ;;  %v3040_v63 = vsel %vm780_vm7, %v3039_v49, %v3038_v56 }
 0x418   : > { %v3042_v32 = vsel %vm783_vm8, %v3041_v33, %v3040_v63 }
 0x419   : > { %3652 = vpow2.f32 %v2256_v29 }
 0x41c   : > { %v3651_v38 = vpop.eup %3650 }
 0x41d   : > { %v1640_v17 = vsel %vm1009_vm10, %v3651_v38, 0.0  ;;  %v1644_v19 = vpack.c.bf16 %v3651_v38, %v3651_v38 }
 0x41e   : > { %1641 = vadd.xlane.f32.xlu0 %v1640_v17  ;;  %v2873_v8 = vpop.permute.xlu1 %2872 }
 0x41f   : > { %v2875_v46 = vsub.f32 %v4458_v28, %v2873_v8  ;;  %3561 = vmatmul.mubr.msk.bf16.vlgmr.msra.gmra.mxu0 %vm1009_vm10, %v1644_v19  ;;  %v3056_v28 = vsel %vm783_vm8, %v3055_v36, %v3054_v10  ;;  %v2483_v19 = vld [vmem:[#allocation4 + $0x10] sm:$0xff]  ;;  %v3103_v10 = vld [vmem:[#allocation4 + $0x18] sm:$0xff] }
 0x420   : > { %3571 = vmatpush3.bf16.msra.mxu0 %v2437_v1  ;;  %3572 = vmatprep.mubr.msk.bf16.mxu0 %vm3713_vm1, %v4753_v23  ;;  %v3057_v55 = vpack.c.b16 %v3056_v28, %v3042_v32 }
 0x421   : > { %v2876_v18 = vmul.f32 1.442695, %v2875_v46  ;;  %3582 = vmatprep.subr.bf16.mxu0 %v4753_v23 }
 0x423   : > { %3654 = vpow2.f32 %v2876_v18 }
 0x424   : > { %3656 = vpow2.f32 %v1015_v58 }
 0x425   : > { %3658 = vpow2.f32 %v1628_v50 }
 0x426   : > { %v3653_v47 = vpop.eup %3652 }
 0x427   : > { %v2260_v2 = vsel %vm1009_vm10, %v3653_v47, 0.0  ;;  %v2264_v30 = vpack.c.bf16 %v3653_v47, %v3653_v47 }
 0x428   : > { %2261 = vadd.xlane.f32.xlu1 %v2260_v2 }
 0x429   : > { %3573 = vmatmul.mubr.msk.bf16.vlgmr.msra.gmra.mxu0 %vm1009_vm10, %v2264_v30 }
 0x42a   : > { %3583 = vmatpush3.bf16.msra.mxu0 %v3057_v55  ;;  %3584 = vmatprep.mubr.msk.bf16.mxu0 %vm3713_vm1, %v4753_v23  ;;  %v1025_v23 = vld [vmem:[#allocation3] sm:$0xff]  ;;  %vm2512_vm1 = vcmask 191616  }
 0x430   : > { %v3655_v5 = vpop.eup %3654 }
 0x431   : > { %v2880_v0 = vsel %vm1009_vm10, %v3655_v5, 0.0  ;;  %v2884_v45 = vpack.c.bf16 %v3655_v5, %v3655_v5  ;;  %v3657_v12 = vpop.eup %3656 }
 0x432   : > { %2881 = vadd.xlane.f32.xlu0 %v2880_v0  ;;  %v3659_v26 = vpop.eup %3658  ;;  %v1026_v57 = vmul.f32 %v3657_v12, %v1025_v23 }
 0x433   : > { %3585 = vmatmul.mubr.msk.bf16.vlgmr.msra.gmra.mxu0 %vm1009_vm10, %v2884_v45 }
 0x439   : > { %1252 = vperm.xlu1 %3642, %v3657_v12  }
 0x43d   : > { %3643 = vset.pattern.permute.xlu1 %v3716_v60 }
 0x43e   : > { %1866 = vperm.xlu1 %3643, %v3659_v26  }
 0x450   : > { %v1029_v24 = vpop.xlane.xlu1 %1028 }
 0x451   : > { %v1030_v35 = vadd.f32 %v1029_v24, %v1026_v57 }
 0x453   : > { %1259 = vst.msk [vmem:[#allocation3] sm:$0xff] %vm1257_vm11, %v1030_v35  ;;  %3660 = vrcp.f32 %v1030_v35 }
 0x454   : > { %3662 = vpow2.f32 %v2248_v40 }
 0x455   : > { %3664 = vpow2.f32 %v2868_v61 }
 0x45a   : > { %v1638_v25 = vld [vmem:[#allocation3] sm:$0xff] }
 0x45b   : > { %v1639_v37 = vmul.f32 %v3659_v26, %v1638_v25 }
 0x460   : > { %v3661_v9 = vpop.eup %3660 }
 0x461   : > { %1267 = vperm.xlu0 %3638, %v3661_v9   ;;  %v3663_v60 = vpop.eup %3662 }
 0x462   : > { %v3665_v15 = vpop.eup %3664 }
 0x465   : > { %3644 = vset.pattern.permute.xlu0 %v3717_v3 }
 0x466   : > { %2486 = vperm.xlu0 %3644, %v3663_v60  }
 0x46a   : > { %3646 = vset.pattern.permute.xlu0 %v3718_v6 }
 0x46b   : > { %3106 = vperm.xlu0 %3646, %v3665_v15  }
 0x4a7   : > { %v1642_v54 = vpop.xlane.xlu0 %1641 }
 0x4a8   : > { %v1643_v21 = vadd.f32 %v1642_v54, %v1639_v37 }
 0x4aa   : > { %1873 = vst.msk [vmem:[#allocation3] sm:$0xff] %vm1871_vm12, %v1643_v21  ;;  %3666 = vrcp.f32 %v1643_v21 }
 0x4b1   : > { %v2262_v41 = vpop.xlane.xlu1 %2261  ;;  %v2258_v22 = vld [vmem:[#allocation3] sm:$0xff] }
 0x4b2   : > { %v2259_v42 = vmul.f32 %v3663_v60, %v2258_v22 }
 0x4b4   : > { %v2263_v43 = vadd.f32 %v2262_v41, %v2259_v42 }
 0x4b5   : > { %v1253_v48 = vpop.permute.xlu1 %1252 }
 0x4b6   : > { %2493 = vst.msk [vmem:[#allocation3] sm:$0xff] %vm2491_vm13, %v2263_v43  ;;  %3668 = vrcp.f32 %v2263_v43  ;;  %v1255_v11 = vmul.f32 %v1253_v48, %v1249_v13 }
 0x4b7   : > { %v3667_v4 = vpop.eup %3666 }
 0x4b8   : > { %1881 = vperm.xlu1 %3643, %v3667_v4   ;;  %v1256_v29 = vadd.f32 %v1255_v11, %v4441_v51 }
 0x4b9   : > { %v1867_v51 = vpop.permute.xlu1 %1866 }
 0x4ba   : > { %1260 = vst.msk [vmem:[#allocation4] sm:$0xff] %vm645_vm0, %v1256_v29  ;;  %v1869_v1 = vmul.f32 %v1867_v51, %v1863_v44 }
 0x4bb   : > { %v2882_v62 = vpop.xlane.xlu0 %2881 }
 0x4bc   : > { %3645 = vset.pattern.permute.xlu1 %v3717_v3 }
 0x4bd   : > { %v2878_v53 = vld [vmem:[#allocation3] sm:$0xff] }
 0x4be   : > { %v2879_v7 = vmul.f32 %v3665_v15, %v2878_v53 }
 0x4c0   : > { %v2883_v39 = vadd.f32 %v2882_v62, %v2879_v7 }
 0x4c2   : > { %3113 = vst.msk [vmem:[#allocation3] sm:$0xff] %vm3111_vm14, %v2883_v39  ;;  %3670 = vrcp.f32 %v2883_v39 }
 0x4c3   : > { %v3669_v52 = vpop.eup %3668 }
 0x4c4   : > { %2501 = vperm.xlu1 %3645, %v3669_v52  }
 0x4c8   : > { %3647 = vset.pattern.permute.xlu1 %v3718_v6 }
 0x4cf   : > { %v3671_v31 = vpop.eup %3670 }
 0x4d0   : > { %3121 = vperm.xlu1 %3647, %v3671_v31  }
 0x4dc   : > { %v1268_v34 = vpop.permute.xlu0 %1267 }
 0x4dd   : > { %v1270_v38 = vmul.f32 %v1268_v34, %v1256_v29 }
 0x4df   : > { %v1271_v3 = vpack.c.bf16 %v1270_v38, %v1270_v38  ;;  %v1856_v49 = vpop.f32.mrf.mxu0 }
 0x4e0   : > { %v1870_v27 = vadd.f32 %v1869_v1, %v1856_v49 }
 0x4e1   : > { %1273 = vst.msk [vmem:[%s4638_s16] sm:$0xf] %vm1272_vm15, %v1271_v3  ;;  %v3562_v6 = vpop.f32.mrf.mxu0  ;;  %v2487_v56 = vpop.permute.xlu0 %2486 }
 0x4e2   : > { %1874 = vst.msk [vmem:[#allocation4 + $0x8] sm:$0xff] %vm645_vm0, %v1870_v27  ;;  %v2489_v8 = vmul.f32 %v2487_v56, %v2483_v19 }
 0x4e3   : > { %v1859_v17 = vpop.f32.mrf.mxu0 }
 0x4e5   : > { %v3563_v59 = vpop.f32.mrf.mxu0 }
 0x4e6   : > { %v3107_v18 = vpop.permute.xlu0 %3106 }
 0x4e7   : > { %v3109_v28 = vmul.f32 %v3107_v18, %v3103_v10 }
 0x4e9   : > { %v2476_v46 = vpop.f32.mrf.mxu0 }
 0x4ea   : > { %v2490_v33 = vadd.f32 %v2489_v8, %v2476_v46 }
 0x4eb   : > { %v3574_v36 = vpop.f32.mrf.mxu0 }
 0x4ec   : > { %2494 = vst.msk [vmem:[#allocation4 + $0x10] sm:$0xff] %vm645_vm0, %v2490_v33 }
 0x4ed   : > { %v2479_v63 = vpop.f32.mrf.mxu0 }
 0x4ef   : > { %v3575_v32 = vpop.f32.mrf.mxu0 }
 0x4f3   : > { %v3096_v47 = vpop.f32.mrf.mxu0 }
 0x4f4   : > { %v3110_v55 = vadd.f32 %v3109_v28, %v3096_v47 }
 0x4f5   : > { %v3586_v16 = vpop.f32.mrf.mxu0 }
 0x4f6   : > { %3114 = vst.msk [vmem:[#allocation4 + $0x18] sm:$0xff] %vm645_vm0, %v3110_v55  ;;  %vm1892_vm0 = vcmask 126016  }
 0x4f7   : > { %v3099_v14 = vpop.f32.mrf.mxu0 }
 0x4f9   : > { %v3587_v20 = vpop.f32.mrf.mxu0 }
 0x533   : > { %v1882_v58 = vpop.permute.xlu1 %1881 }
 0x534   : > { %v1884_v2 = vmul.f32 %v1882_v58, %v1870_v27 }
 0x536   : > { %v3521_v30 = vpack.c.bf16 %v1884_v2, %v1884_v2 }
 0x538   : > { %1889 = vrot.lane.b32.xlu1 %v3521_v30, %s3719_s20 }
 0x53f   : > { %v2502_v50 = vpop.permute.xlu1 %2501 }
 0x540   : > { %v2504_v5 = vmul.f32 %v2502_v50, %v2490_v33 }
 0x542   : > { %v3522_v0 = vpack.c.bf16 %v2504_v5, %v2504_v5 }
 0x544   : > { %2509 = vrot.lane.b32.xlu1 %v3522_v0, %s3720_s17 }
 0x54b   : > { %v3122_v45 = vpop.permute.xlu1 %3121 }
 0x54c   : > { %v3124_v12 = vmul.f32 %v3122_v45, %v3110_v55 }
 0x54e   : > { %v3523_v26 = vpack.c.bf16 %v3124_v12, %v3124_v12 }
 0x550   : > { %3129 = vrot.lane.b32.xlu1 %v3523_v26, %s3721_s24 }
 0x5aa   : > { %v1890_v23 = vpop.permute.xlu1 %1889 }
 0x5ab   : > { %1893 = vst.msk [vmem:[%s4638_s16] sm:$0xf] %vm1892_vm0, %v1890_v23 }
 0x5b6   : > { %v2510_v57 = vpop.permute.xlu1 %2509 }
 0x5b7   : > { %2513 = vst.msk [vmem:[%s4638_s16] sm:$0xf] %vm2512_vm1, %v2510_v57 }
 0x5c2   : > { %v3130_v24 = vpop.permute.xlu1 %3129 }
 0x5c3   : > { %3133 = vst.msk [vmem:[%s4638_s16] sm:$0xf] %vm3132_vm2, %v3130_v24 }
 0x5c4 PF: > { %s15_s22 = sadd.s32 1, %s3710_s22   ;;  %s4777_s18 = smov %s3698_s19 }
 0x5c5   : > { %p12_p10 = scmp.ge.s32.totalorder %s15_s22, 4   ;;  %s4778_s19 = smov %s3791_s27 }
 0x5c6   : > { %s4779_s20 = smov %s3706_s21  ;;  %s4780_s21 = smov %s4782_s23 }
 0x5c7   :  { %14 = sbr.rel (!%p12_p10) target bundleno = 3 (0x3), region = 197 }

</bundles_post_ra>
